<compile_context>
chip_gen: v7x
topology: tpu7x:2x2x1
jax: 0.10.0
libtpu: 0.0.40
codegen_flags: <defaults>
</compile_context>

<pallas_src>
import functools
import math

import jax
import jax.numpy as jnp
from jax.experimental import pallas as pl
from jax.experimental.pallas import tpu as pltpu

_BN_EPS = 1e-5
_LANE = 128


# ---------------------------------------------------------------------------
# Helpers
# ---------------------------------------------------------------------------
def _rup(x, m):
    return ((x + m - 1) // m) * m


def _pick_tile(dim, prefs):
    for p in prefs:
        if dim % p == 0:
            return p
    return dim


# ---------------------------------------------------------------------------
# Fused matmul kernels:  out = maybe_relu(x @ w + bias [+ residual])
# ---------------------------------------------------------------------------
def _fused_matmul_kernel_2d(*refs, relu, has_residual):
    """Single K step: no accumulator scratch, both grid axes parallel."""
    if has_residual:
        x_ref, w_ref, b_ref, r_ref, o_ref = refs
    else:
        x_ref, w_ref, b_ref, o_ref = refs
    y = jnp.dot(x_ref[...], w_ref[...], preferred_element_type=jnp.float32)
    y = y + b_ref[...]
    if has_residual:
        y = y + r_ref[...]
    if relu:
        y = jnp.maximum(y, 0.0)
    o_ref[...] = y.astype(o_ref.dtype)


def _fused_matmul_kernel_3d(*refs, relu, has_residual):
    """Multi K step: f32 VMEM accumulator, init/finalize via pl.when."""
    if has_residual:
        x_ref, w_ref, b_ref, r_ref, o_ref, acc_ref = refs
    else:
        x_ref, w_ref, b_ref, o_ref, acc_ref = refs

    @pl.when(pl.program_id(2) == 0)
    def _():
        acc_ref[...] = jnp.zeros_like(acc_ref)

    acc_ref[...] += jnp.dot(x_ref[...], w_ref[...],
                            preferred_element_type=jnp.float32)

    @pl.when(pl.program_id(2) == pl.num_programs(2) - 1)
    def _():
        y = acc_ref[...] + b_ref[...]
        if has_residual:
            y = y + r_ref[...]
        if relu:
            y = jnp.maximum(y, 0.0)
        o_ref[...] = y.astype(o_ref.dtype)


def fused_matmul(x, w, bias, residual=None, *, relu, out_dtype=jnp.float32):
    """x: (M, K); w: (K, N) bf16; bias: (1, N) f32; residual: (M, N) f32 or
    None.  K and N must be multiples of 128."""
    M, K = x.shape
    Kw, N = w.shape
    assert K == Kw and K % _LANE == 0 and N % _LANE == 0

    Mp = _rup(M, _LANE)
    tm = _pick_tile(Mp, (512, 256, 128))
    tn = _pick_tile(N, (256, 128))      # 256-wide tiles feed v6e/v7x MXU fully
    # If K fits comfortably in VMEM, take it in one step (fast 2-D path).
    if K <= 2048:
        tk = K
    else:
        tk = _pick_tile(K, (512, 384, 256, 128))
    nk = K // tk

    xp = x if Mp == M else jnp.pad(x, ((0, Mp - M), (0, 0)))
    xp = xp.astype(jnp.bfloat16)

    args = [xp, w.astype(jnp.bfloat16), bias.astype(jnp.float32)]
    has_res = residual is not None
    if has_res:
        r = residual if Mp == M else jnp.pad(residual, ((0, Mp - M), (0, 0)))
        args.append(r.astype(jnp.float32))

    if nk == 1:
        in_specs = [
            pl.BlockSpec((tm, tk), lambda i, j: (i, 0)),
            pl.BlockSpec((tk, tn), lambda i, j: (0, j)),
            pl.BlockSpec((1, tn), lambda i, j: (0, j)),
        ]
        if has_res:
            in_specs.append(pl.BlockSpec((tm, tn), lambda i, j: (i, j)))
        kernel = functools.partial(_fused_matmul_kernel_2d, relu=relu,
                                   has_residual=has_res)
        grid = (Mp // tm, N // tn)
        out_specs = pl.BlockSpec((tm, tn), lambda i, j: (i, j))
        scratch_shapes = []
        dims = ("parallel", "parallel")
    else:
        in_specs = [
            pl.BlockSpec((tm, tk), lambda i, j, k: (i, k)),
            pl.BlockSpec((tk, tn), lambda i, j, k: (k, j)),
            pl.BlockSpec((1, tn), lambda i, j, k: (0, j)),
        ]
        if has_res:
            in_specs.append(pl.BlockSpec((tm, tn), lambda i, j, k: (i, j)))
        kernel = functools.partial(_fused_matmul_kernel_3d, relu=relu,
                                   has_residual=has_res)
        grid = (Mp // tm, N // tn, nk)
        out_specs = pl.BlockSpec((tm, tn), lambda i, j, k: (i, j))
        scratch_shapes = [pltpu.VMEM((tm, tn), jnp.float32)]
        dims = ("parallel", "parallel", "arbitrary")

    out = pl.pallas_call(
        kernel,
        out_shape=jax.ShapeDtypeStruct((Mp, N), out_dtype),
        grid_spec=pltpu.PrefetchScalarGridSpec(
            num_scalar_prefetch=0,
            grid=grid,
            in_specs=in_specs,
            out_specs=out_specs,
            scratch_shapes=scratch_shapes,
        ),
        compiler_params=pltpu.CompilerParams(
            dimension_semantics=dims,
            vmem_limit_bytes=32 * 1024 * 1024,
        ),
    )(*args)
    return out[:M]


# ---------------------------------------------------------------------------
# Conv wrappers (NHWC, channel dims already padded to multiples of 128)
# ---------------------------------------------------------------------------
def conv1x1_bn_act(x_nhwc, wkn, bias, *, stride=1, relu, residual_mn=None,
                   out_dtype=jnp.float32):
    if stride > 1:
        x_nhwc = x_nhwc[:, ::stride, ::stride, :]
    N, H, W, C = x_nhwc.shape
    out = fused_matmul(x_nhwc.reshape(N * H * W, C), wkn, bias,
                       residual=residual_mn, relu=relu, out_dtype=out_dtype)
    return out.reshape(N, H, W, wkn.shape[1])


def conv3x3_bn_act(x_nhwc, wkn, bias, *, stride, relu, out_dtype=jnp.float32):
    N, H, W, C = x_nhwc.shape
    xp = jnp.pad(x_nhwc, ((0, 0), (1, 1), (1, 1), (0, 0)))
    Ho = (H + 2 - 3) // stride + 1
    Wo = (W + 2 - 3) // stride + 1
    taps = []
    for kh in range(3):
        for kw in range(3):
            taps.append(xp[:, kh:kh + stride * Ho:stride,
                           kw:kw + stride * Wo:stride, :])
    patches = jnp.concatenate(taps, axis=-1)           # (N, Ho, Wo, 9*C)
    out = fused_matmul(patches.reshape(N * Ho * Wo, 9 * C), wkn, bias,
                       relu=relu, out_dtype=out_dtype)
    return out.reshape(N, Ho, Wo, wkn.shape[1])


# ---------------------------------------------------------------------------
# Parameters: BN folded into weights, weights pre-transposed to (K, Cout),
# channel dims padded to multiples of 128, cast to bf16 once.
# ---------------------------------------------------------------------------
def _fold_bn(gamma, beta, mean, var):
    scale = gamma / jnp.sqrt(var + _BN_EPS)
    bias = beta - mean * scale
    return scale, bias


def _prep_conv(w_oihw, scale, bias, cin_pad, cout_pad):
    cout, cin, kh, kw = w_oihw.shape
    w = jnp.transpose(w_oihw, (2, 3, 1, 0)) * scale[None, None, None, :]
    w = jnp.pad(w, ((0, 0), (0, 0), (0, cin_pad - cin), (0, cout_pad - cout)))
    wkn = w.reshape(kh * kw * cin_pad, cout_pad).astype(jnp.bfloat16)
    b = jnp.pad(bias, (0, cout_pad - cout)).reshape(1, cout_pad)
    return wkn, b.astype(jnp.float32)


def make_bottleneck_params(key, inplanes, planes, stride=1,
                           base_width=64, groups=1):
    assert groups == 1, "groups>1 not supported"
    width = int(planes * (base_width / 64.0)) * groups
    cout = planes * 4                                  # Bottleneck.expansion
    keys = iter(jax.random.split(key, 32))

    def conv_w(co, ci, k):
        std = math.sqrt(2.0 / (co * k * k))            # kaiming fan_out
        return jax.random.normal(next(keys), (co, ci, k, k), jnp.float32) * std

    def bn_p(c):
        gamma = 1.0 + 0.1 * jax.random.normal(next(keys), (c,), jnp.float32)
        beta = 0.1 * jax.random.normal(next(keys), (c,), jnp.float32)
        mean = 0.1 * jax.random.normal(next(keys), (c,), jnp.float32)
        var = 1.0 + 0.1 * jax.random.uniform(next(keys), (c,), jnp.float32)
        return gamma, beta, mean, var

    raw = {'stride': stride,
           'w1': conv_w(width, inplanes, 1), 'bn1': bn_p(width),
           'w2': conv_w(width, width, 3), 'bn2': bn_p(width),
           'w3': conv_w(cout, width, 1), 'bn3': bn_p(cout)}
    needs_ds = (stride != 1) or (inplanes != cout)
    if needs_ds:
        raw['wd'] = conv_w(cout, inplanes, 1)
        raw['bnd'] = bn_p(cout)

    cin_p, width_p, cout_p = _rup(inplanes, _LANE), _rup(width, _LANE), _rup(cout, _LANE)
    params = {'stride': stride, 'cin': inplanes, 'cin_pad': cin_p,
              'cout': cout, 'cout_pad': cout_p}
    s, b = _fold_bn(*raw['bn1'])
    params['w1'], params['b1'] = _prep_conv(raw['w1'], s, b, cin_p, width_p)
    s, b = _fold_bn(*raw['bn2'])
    params['w2'], params['b2'] = _prep_conv(raw['w2'], s, b, width_p, width_p)
    s, b = _fold_bn(*raw['bn3'])
    params['w3'], params['b3'] = _prep_conv(raw['w3'], s, b, width_p, cout_p)
    if needs_ds:
        s, b = _fold_bn(*raw['bnd'])
        params['wd'], params['bd'] = _prep_conv(raw['wd'], s, b, cin_p, cout_p)
    return params, raw


# ---------------------------------------------------------------------------
# Bottleneck forward (mirrors the PyTorch module)
# ---------------------------------------------------------------------------
def bottleneck_forward(x_nchw, params):
    N, C, H, W = x_nchw.shape
    cin_p, cout, cout_p = params['cin_pad'], params['cout'], params['cout_pad']
    stride = params['stride']

    x = jnp.transpose(x_nchw, (0, 2, 3, 1)).astype(jnp.float32)   # NCHW -> NHWC
    x = jnp.pad(x, ((0, 0), (0, 0), (0, 0), (0, cin_p - C)))      # lane-pad channels

    # Intermediates between convs are stored bf16 (next matmul casts anyway).
    out = conv1x1_bn_act(x, params['w1'], params['b1'], relu=True,
                         out_dtype=jnp.bfloat16)
    out = conv3x3_bn_act(out, params['w2'], params['b2'],
                         stride=stride, relu=True, out_dtype=jnp.bfloat16)

    if 'wd' in params:
        identity = conv1x1_bn_act(x, params['wd'], params['bd'],
                                  stride=stride, relu=False,
                                  out_dtype=jnp.float32)
    else:
        identity = x                                   # requires cin_p == cout_p
    Ni, Hi, Wi, _ = identity.shape
    identity_mn = identity.reshape(Ni * Hi * Wi, cout_p).astype(jnp.float32)

    # conv3 + bn3 + residual add + final ReLU, fused in one kernel.
    out = conv1x1_bn_act(out, params['w3'], params['b3'], relu=True,
                         residual_mn=identity_mn, out_dtype=jnp.float32)

    out = out[..., :cout]
    return jnp.transpose(out, (0, 3, 1, 2))            # NHWC -> NCHW


# ---------------------------------------------------------------------------
# Pure-JAX reference (f32, lax.conv) for correctness checking
# ---------------------------------------------------------------------------
def _ref_bottleneck(x_nchw, raw):
    def conv(x, w, stride, pad):
        return jax.lax.conv_general_dilated(
            x, w, window_strides=(stride, stride),
            padding=((pad, pad), (pad, pad)),
            dimension_numbers=('NCHW', 'OIHW', 'NCHW'))

    def bn(x, gamma, beta, mean, var):
        s = gamma / jnp.sqrt(var + _BN_EPS)
        b = beta - mean * s
        return x * s[None, :, None, None] + b[None, :, None, None]

    out = jax.nn.relu(bn(conv(x_nchw, raw['w1'], 1, 0), *raw['bn1']))
    out = jax.nn.relu(bn(conv(out, raw['w2'], raw['stride'], 1), *raw['bn2']))
    out = bn(conv(out, raw['w3'], 1, 0), *raw['bn3'])
    if 'wd' in raw:
        identity = bn(conv(x_nchw, raw['wd'], raw['stride'], 0), *raw['bnd'])
    else:
        identity = x_nchw
    return jax.nn.relu(out + identity)


# ---------------------------------------------------------------------------
if __name__ == "__main__":
    key = jax.random.PRNGKey(0)
    k_x, k_p = jax.random.split(key)

    inplanes, planes, stride = 64, 32, 2          # width=32, out=128, downsample path
    x = jax.random.normal(k_x, (2, inplanes, 16, 16), jnp.float32)   # NCHW
    params, raw = make_bottleneck_params(k_p, inplanes, planes, stride=stride)

    fwd = jax.jit(lambda t: bottleneck_forward(t, params))
    out = jax.block_until_ready(fwd(x))

    ref = jax.block_until_ready(_ref_bottleneck(x, raw))

    assert out.shape == (2, planes * 4, 16 // stride, 16 // stride), out.shape
    assert bool(jnp.all(jnp.isfinite(out)))
    rel_err = float(jnp.max(jnp.abs(out - ref)) / (jnp.max(jnp.abs(ref)) + 1e-6))
    assert rel_err < 5e-2, rel_err                # bf16-operand tolerance

    print("KERNEL_OK")
</pallas_src>

<mosaic_0001>
module attributes {stable_mosaic.version = 11 : i64} {
  func.func @_fused_matmul_kernel_2d(%arg0: i32, %arg1: i32, %arg2: memref<128x128xbf16, #tpu.memory_space<vmem>>, %arg3: memref<128x128xbf16, #tpu.memory_space<vmem>>, %arg4: memref<1x128xf32, #tpu.memory_space<vmem>>, %arg5: memref<128x128xf32, #tpu.memory_space<vmem>>) attributes {dimension_semantics = [#tpu.dimension_semantics<parallel>, #tpu.dimension_semantics<parallel>], iteration_bounds = array<i64: 1, 1>, scalar_prefetch = 0 : i64, scratch_operands = 0 : i64, tpu.core_type = #tpu.core_type<tc>, window_params = [{transform_indices = @transform_0, window_bounds = array<i64: 128, 128>}, {transform_indices = @transform_1, window_bounds = array<i64: 128, 128>}, {transform_indices = @transform_2, window_bounds = array<i64: 1, 128>}, {transform_indices = @transform_3, window_bounds = array<i64: 128, 128>}]} {
    %c0 = arith.constant 0 : index
    %c0_0 = arith.constant 0 : index
    %0 = vector.load %arg2[%c0, %c0_0] : memref<128x128xbf16, #tpu.memory_space<vmem>>, vector<128x128xbf16>
    %c0_1 = arith.constant 0 : index
    %c0_2 = arith.constant 0 : index
    %1 = vector.load %arg3[%c0_1, %c0_2] : memref<128x128xbf16, #tpu.memory_space<vmem>>, vector<128x128xbf16>
    %cst = arith.constant dense<0.000000e+00> : vector<128x128xf32>
    %2 = tpu.matmul %0, %1, %cst {dimension_numbers = #tpu.dot_dimension_numbers<[1], [0], [0], [1], [0, 0, 1, 1], [], []>} : vector<128x128xbf16>, vector<128x128xbf16>, vector<128x128xf32> -> vector<128x128xf32>
    %c0_3 = arith.constant 0 : index
    %c0_4 = arith.constant 0 : index
    %3 = vector.load %arg4[%c0_3, %c0_4] : memref<1x128xf32, #tpu.memory_space<vmem>>, vector<1x128xf32>
    %4 = vector.broadcast %3 : vector<1x128xf32> to vector<128x128xf32>
    %5 = arith.addf %2, %4 : vector<128x128xf32>
    %c0_5 = arith.constant 0 : index
    %c0_6 = arith.constant 0 : index
    %6 = vector.load %arg5[%c0_5, %c0_6] : memref<128x128xf32, #tpu.memory_space<vmem>>, vector<128x128xf32>
    tpu.vector_store %arg5[%c0_5, %c0_6], %5 {strides = array<i32>} : memref<128x128xf32, #tpu.memory_space<vmem>>, vector<128x128xf32>,
    return
  }
  func.func @transform_0(%arg0: i32, %arg1: i32) -> (i32, i32) {
    %c0_i32 = arith.constant 0 : i32
    %c0_i32_0 = arith.constant 0 : i32
    return %arg0, %c0_i32 : i32, i32
  }
  func.func @transform_1(%arg0: i32, %arg1: i32) -> (i32, i32) {
    %c0_i32 = arith.constant 0 : i32
    %c0_i32_0 = arith.constant 0 : i32
    return %c0_i32, %arg1 : i32, i32
  }
  func.func @transform_2(%arg0: i32, %arg1: i32) -> (i32, i32) {
    %c0_i32 = arith.constant 0 : i32
    %c0_i32_0 = arith.constant 0 : i32
    return %c0_i32, %arg1 : i32, i32
  }
  func.func @transform_3(%arg0: i32, %arg1: i32) -> (i32, i32) {
    %c0_i32 = arith.constant 0 : i32
    return %arg0, %arg1 : i32, i32
  }
}

module attributes {stable_mosaic.version = 11 : i64} {
  func.func @_fused_matmul_kernel_2d(%arg0: i32, %arg1: i32, %arg2: memref<512x128xbf16, #tpu.memory_space<vmem>>, %arg3: memref<128x128xbf16, #tpu.memory_space<vmem>>, %arg4: memref<1x128xf32, #tpu.memory_space<vmem>>, %arg5: memref<512x128xbf16, #tpu.memory_space<vmem>>) attributes {dimension_semantics = [#tpu.dimension_semantics<parallel>, #tpu.dimension_semantics<parallel>], iteration_bounds = array<i64: 1, 1>, scalar_prefetch = 0 : i64, scratch_operands = 0 : i64, tpu.core_type = #tpu.core_type<tc>, window_params = [{transform_indices = @transform_0, window_bounds = array<i64: 512, 128>}, {transform_indices = @transform_1, window_bounds = array<i64: 128, 128>}, {transform_indices = @transform_2, window_bounds = array<i64: 1, 128>}, {transform_indices = @transform_3, window_bounds = array<i64: 512, 128>}]} {
    %c0 = arith.constant 0 : index
    %c0_0 = arith.constant 0 : index
    %0 = vector.load %arg2[%c0, %c0_0] : memref<512x128xbf16, #tpu.memory_space<vmem>>, vector<512x128xbf16>
    %c0_1 = arith.constant 0 : index
    %c0_2 = arith.constant 0 : index
    %1 = vector.load %arg3[%c0_1, %c0_2] : memref<128x128xbf16, #tpu.memory_space<vmem>>, vector<128x128xbf16>
    %cst = arith.constant dense<0.000000e+00> : vector<512x128xf32>
    %2 = tpu.matmul %0, %1, %cst {dimension_numbers = #tpu.dot_dimension_numbers<[1], [0], [0], [1], [0, 0, 1, 1], [], []>} : vector<512x128xbf16>, vector<128x128xbf16>, vector<512x128xf32> -> vector<512x128xf32>
    %c0_3 = arith.constant 0 : index
    %c0_4 = arith.constant 0 : index
    %3 = vector.load %arg4[%c0_3, %c0_4] : memref<1x128xf32, #tpu.memory_space<vmem>>, vector<1x128xf32>
    %4 = vector.broadcast %3 : vector<1x128xf32> to vector<512x128xf32>
    %5 = arith.addf %2, %4 : vector<512x128xf32>
    %cst_5 = arith.constant 0.000000e+00 : f32
    %6 = vector.broadcast %cst_5 : f32 to vector<512x128xf32>
    %7 = arith.maximumf %5, %6 : vector<512x128xf32>
    %8 = arith.truncf %7 : vector<512x128xf32> to vector<512x128xbf16>
    %c0_6 = arith.constant 0 : index
    %c0_7 = arith.constant 0 : index
    %9 = vector.load %arg5[%c0_6, %c0_7] : memref<512x128xbf16, #tpu.memory_space<vmem>>, vector<512x128xbf16>
    tpu.vector_store %arg5[%c0_6, %c0_7], %8 {strides = array<i32>} : memref<512x128xbf16, #tpu.memory_space<vmem>>, vector<512x128xbf16>,
    return
  }
  func.func @transform_0(%arg0: i32, %arg1: i32) -> (i32, i32) {
    %c0_i32 = arith.constant 0 : i32
    %c0_i32_0 = arith.constant 0 : i32
    return %arg0, %c0_i32 : i32, i32
  }
  func.func @transform_1(%arg0: i32, %arg1: i32) -> (i32, i32) {
    %c0_i32 = arith.constant 0 : i32
    %c0_i32_0 = arith.constant 0 : i32
    return %c0_i32, %arg1 : i32, i32
  }
  func.func @transform_2(%arg0: i32, %arg1: i32) -> (i32, i32) {
    %c0_i32 = arith.constant 0 : i32
    %c0_i32_0 = arith.constant 0 : i32
    return %c0_i32, %arg1 : i32, i32
  }
  func.func @transform_3(%arg0: i32, %arg1: i32) -> (i32, i32) {
    %c0_i32 = arith.constant 0 : i32
    return %arg0, %arg1 : i32, i32
  }
}

module attributes {stable_mosaic.version = 11 : i64} {
  func.func @_fused_matmul_kernel_2d(%arg0: i32, %arg1: i32, %arg2: memref<128x1152xbf16, #tpu.memory_space<vmem>>, %arg3: memref<1152x128xbf16, #tpu.memory_space<vmem>>, %arg4: memref<1x128xf32, #tpu.memory_space<vmem>>, %arg5: memref<128x128xbf16, #tpu.memory_space<vmem>>) attributes {dimension_semantics = [#tpu.dimension_semantics<parallel>, #tpu.dimension_semantics<parallel>], iteration_bounds = array<i64: 1, 1>, scalar_prefetch = 0 : i64, scratch_operands = 0 : i64, tpu.core_type = #tpu.core_type<tc>, window_params = [{transform_indices = @transform_0, window_bounds = array<i64: 128, 1152>}, {transform_indices = @transform_1, window_bounds = array<i64: 1152, 128>}, {transform_indices = @transform_2, window_bounds = array<i64: 1, 128>}, {transform_indices = @transform_3, window_bounds = array<i64: 128, 128>}]} {
    %c0 = arith.constant 0 : index
    %c0_0 = arith.constant 0 : index
    %0 = vector.load %arg2[%c0, %c0_0] : memref<128x1152xbf16, #tpu.memory_space<vmem>>, vector<128x1152xbf16>
    %c0_1 = arith.constant 0 : index
    %c0_2 = arith.constant 0 : index
    %1 = vector.load %arg3[%c0_1, %c0_2] : memref<1152x128xbf16, #tpu.memory_space<vmem>>, vector<1152x128xbf16>
    %cst = arith.constant dense<0.000000e+00> : vector<128x128xf32>
    %2 = tpu.matmul %0, %1, %cst {dimension_numbers = #tpu.dot_dimension_numbers<[1], [0], [0], [1], [0, 0, 1, 1], [], []>} : vector<128x1152xbf16>, vector<1152x128xbf16>, vector<128x128xf32> -> vector<128x128xf32>
    %c0_3 = arith.constant 0 : index
    %c0_4 = arith.constant 0 : index
    %3 = vector.load %arg4[%c0_3, %c0_4] : memref<1x128xf32, #tpu.memory_space<vmem>>, vector<1x128xf32>
    %4 = vector.broadcast %3 : vector<1x128xf32> to vector<128x128xf32>
    %5 = arith.addf %2, %4 : vector<128x128xf32>
    %cst_5 = arith.constant 0.000000e+00 : f32
    %6 = vector.broadcast %cst_5 : f32 to vector<128x128xf32>
    %7 = arith.maximumf %5, %6 : vector<128x128xf32>
    %8 = arith.truncf %7 : vector<128x128xf32> to vector<128x128xbf16>
    %c0_6 = arith.constant 0 : index
    %c0_7 = arith.constant 0 : index
    %9 = vector.load %arg5[%c0_6, %c0_7] : memref<128x128xbf16, #tpu.memory_space<vmem>>, vector<128x128xbf16>
    tpu.vector_store %arg5[%c0_6, %c0_7], %8 {strides = array<i32>} : memref<128x128xbf16, #tpu.memory_space<vmem>>, vector<128x128xbf16>,
    return
  }
  func.func @transform_0(%arg0: i32, %arg1: i32) -> (i32, i32) {
    %c0_i32 = arith.constant 0 : i32
    %c0_i32_0 = arith.constant 0 : i32
    return %arg0, %c0_i32 : i32, i32
  }
  func.func @transform_1(%arg0: i32, %arg1: i32) -> (i32, i32) {
    %c0_i32 = arith.constant 0 : i32
    %c0_i32_0 = arith.constant 0 : i32
    return %c0_i32, %arg1 : i32, i32
  }
  func.func @transform_2(%arg0: i32, %arg1: i32) -> (i32, i32) {
    %c0_i32 = arith.constant 0 : i32
    %c0_i32_0 = arith.constant 0 : i32
    return %c0_i32, %arg1 : i32, i32
  }
  func.func @transform_3(%arg0: i32, %arg1: i32) -> (i32, i32) {
    %c0_i32 = arith.constant 0 : i32
    return %arg0, %arg1 : i32, i32
  }
}

module attributes {stable_mosaic.version = 11 : i64} {
  func.func @_fused_matmul_kernel_2d(%arg0: i32, %arg1: i32, %arg2: memref<128x128xbf16, #tpu.memory_space<vmem>>, %arg3: memref<128x128xbf16, #tpu.memory_space<vmem>>, %arg4: memref<1x128xf32, #tpu.memory_space<vmem>>, %arg5: memref<128x128xf32, #tpu.memory_space<vmem>>, %arg6: memref<128x128xf32, #tpu.memory_space<vmem>>) attributes {dimension_semantics = [#tpu.dimension_semantics<parallel>, #tpu.dimension_semantics<parallel>], iteration_bounds = array<i64: 1, 1>, scalar_prefetch = 0 : i64, scratch_operands = 0 : i64, tpu.core_type = #tpu.core_type<tc>, window_params = [{transform_indices = @transform_0, window_bounds = array<i64: 128, 128>}, {transform_indices = @transform_1, window_bounds = array<i64: 128, 128>}, {transform_indices = @transform_2, window_bounds = array<i64: 1, 128>}, {transform_indices = @transform_3, window_bounds = array<i64: 128, 128>}, {transform_indices = @transform_4, window_bounds = array<i64: 128, 128>}]} {
    %c0 = arith.constant 0 : index
    %c0_0 = arith.constant 0 : index
    %0 = vector.load %arg2[%c0, %c0_0] : memref<128x128xbf16, #tpu.memory_space<vmem>>, vector<128x128xbf16>
    %c0_1 = arith.constant 0 : index
    %c0_2 = arith.constant 0 : index
    %1 = vector.load %arg3[%c0_1, %c0_2] : memref<128x128xbf16, #tpu.memory_space<vmem>>, vector<128x128xbf16>
    %cst = arith.constant dense<0.000000e+00> : vector<128x128xf32>
    %2 = tpu.matmul %0, %1, %cst {dimension_numbers = #tpu.dot_dimension_numbers<[1], [0], [0], [1], [0, 0, 1, 1], [], []>} : vector<128x128xbf16>, vector<128x128xbf16>, vector<128x128xf32> -> vector<128x128xf32>
    %c0_3 = arith.constant 0 : index
    %c0_4 = arith.constant 0 : index
    %3 = vector.load %arg4[%c0_3, %c0_4] : memref<1x128xf32, #tpu.memory_space<vmem>>, vector<1x128xf32>
    %4 = vector.broadcast %3 : vector<1x128xf32> to vector<128x128xf32>
    %5 = arith.addf %2, %4 : vector<128x128xf32>
    %c0_5 = arith.constant 0 : index
    %c0_6 = arith.constant 0 : index
    %6 = vector.load %arg5[%c0_5, %c0_6] : memref<128x128xf32, #tpu.memory_space<vmem>>, vector<128x128xf32>
    %7 = arith.addf %5, %6 : vector<128x128xf32>
    %cst_7 = arith.constant 0.000000e+00 : f32
    %8 = vector.broadcast %cst_7 : f32 to vector<128x128xf32>
    %9 = arith.maximumf %7, %8 : vector<128x128xf32>
    %c0_8 = arith.constant 0 : index
    %c0_9 = arith.constant 0 : index
    %10 = vector.load %arg6[%c0_8, %c0_9] : memref<128x128xf32, #tpu.memory_space<vmem>>, vector<128x128xf32>
    tpu.vector_store %arg6[%c0_8, %c0_9], %9 {strides = array<i32>} : memref<128x128xf32, #tpu.memory_space<vmem>>, vector<128x128xf32>,
    return
  }
  func.func @transform_0(%arg0: i32, %arg1: i32) -> (i32, i32) {
    %c0_i32 = arith.constant 0 : i32
    %c0_i32_0 = arith.constant 0 : i32
    return %arg0, %c0_i32 : i32, i32
  }
  func.func @transform_1(%arg0: i32, %arg1: i32) -> (i32, i32) {
    %c0_i32 = arith.constant 0 : i32
    %c0_i32_0 = arith.constant 0 : i32
    return %c0_i32, %arg1 : i32, i32
  }
  func.func @transform_2(%arg0: i32, %arg1: i32) -> (i32, i32) {
    %c0_i32 = arith.constant 0 : i32
    %c0_i32_0 = arith.constant 0 : i32
    return %c0_i32, %arg1 : i32, i32
  }
  func.func @transform_3(%arg0: i32, %arg1: i32) -> (i32, i32) {
    %c0_i32 = arith.constant 0 : i32
    return %arg0, %arg1 : i32, i32
  }
  func.func @transform_4(%arg0: i32, %arg1: i32) -> (i32, i32) {
    %c0_i32 = arith.constant 0 : i32
    return %arg0, %arg1 : i32, i32
  }
}

</mosaic_0001>

<bundles_post_ra>
// kernel: _lambda_.6
= control target key start
LH: loop header
LB: loop body
LE: loop exit
PB: predicated region body
PF: predicated region fallthrough
CT: control target
= control target key end

     0   :  { %s483_s1 = inlined_call_operand.vmem [shape: bf16[128,128], index: 1, kind: input, shape index: {}]   ;;  %s484_s0 = inlined_call_operand.vmem [shape: bf16[128,128], index: 0, kind: input, shape index: {}]   ;;  %s485_s2 = inlined_call_operand.vmem [shape: f32[1,128], index: 2, kind: input, shape index: {}]   ;;  %s486_s3 = inlined_call_operand.vmem [shape: f32[128,128], index: 3, kind: output, shape index: {}]  }
   0x1   :  { %v348_v0 = vld [vmem:[%s483_s1] sm:$0xff]   ;;  %v349_v1 = vld [vmem:[%s483_s1 + $0x8] sm:$0xff]   ;;  %v350_v2 = vld [vmem:[%s483_s1 + $0x10] sm:$0xff]  }
   0x2   :  { %300 = vmatprep.subr.bf16.mxu0 %v348_v0  ;;  %332 = vmatprep.subr.bf16.mxu1 %v348_v0  ;;  %v351_v3 = vld [vmem:[%s483_s1 + $0x18] sm:$0xff]   ;;  %v356_v4 = vld [vmem:[%s484_s0] sm:$0xff]   ;;  %v353_v7 = vld [vmem:[%s483_s1 + $0x28] sm:$0xff]  }
   0x3   :  { %301 = vmatpush3.bf16.msra.mxu0 %v348_v0  ;;  %340 = vmatpush3.bf16.msra.mxu1 %v348_v0  ;;  %v357_v5 = vld [vmem:[%s484_s0 + $0x20] sm:$0xff]   ;;  %v354_v8 = vld [vmem:[%s483_s1 + $0x30] sm:$0xff]   ;;  %v355_v9 = vld [vmem:[%s483_s1 + $0x38] sm:$0xff]  }
   0x4   :  { %302 = vmatprep.subr.bf16.mxu0 %v349_v1  ;;  %333 = vmatprep.subr.bf16.mxu1 %v349_v1  ;;  %v352_v6 = vld [vmem:[%s483_s1 + $0x20] sm:$0xff]   ;;  %v358_v10 = vld [vmem:[%s484_s0 + $0x8] sm:$0xff]   ;;  %v360_v12 = vld [vmem:[%s484_s0 + $0x10] sm:$0xff]  }
   0x5   :  { %316 = vmatprep.mubr.bf16.mxu0 %v356_v4  ;;  %324 = vmatprep.mubr.bf16.mxu1 %v357_v5  ;;  %v359_v11 = vld [vmem:[%s484_s0 + $0x28] sm:$0xff]   ;;  %v361_v13 = vld [vmem:[%s484_s0 + $0x30] sm:$0xff]   ;;  %v362_v14 = vld [vmem:[%s484_s0 + $0x18] sm:$0xff]  }
   0x6   :  { %v363_v15 = vld [vmem:[%s484_s0 + $0x38] sm:$0xff]   ;;  %v267_v16 = vld [vmem:[%s485_s2] ss:$0 sm:$0xff] }
   0x7   :  { %303 = vmatpush3.bf16.msra.mxu0 %v349_v1  ;;  %341 = vmatpush3.bf16.msra.mxu1 %v349_v1 }
   0x8   :  { %304 = vmatprep.subr.bf16.mxu0 %v350_v2  ;;  %334 = vmatprep.subr.bf16.mxu1 %v350_v2 }
   0xb   :  { %305 = vmatpush3.bf16.msra.mxu0 %v350_v2  ;;  %342 = vmatpush3.bf16.msra.mxu1 %v350_v2 }
   0xc   :  { %306 = vmatprep.subr.bf16.mxu0 %v351_v3  ;;  %335 = vmatprep.subr.bf16.mxu1 %v351_v3 }
   0xf   :  { %307 = vmatpush3.bf16.msra.mxu0 %v351_v3  ;;  %343 = vmatpush3.bf16.msra.mxu1 %v351_v3 }
  0x10   :  { %308 = vmatprep.subr.bf16.mxu0 %v352_v6  ;;  %336 = vmatprep.subr.bf16.mxu1 %v352_v6 }
  0x13   :  { %309 = vmatpush3.bf16.msra.mxu0 %v352_v6  ;;  %344 = vmatpush3.bf16.msra.mxu1 %v352_v6 }
  0x14   :  { %310 = vmatprep.subr.bf16.mxu0 %v353_v7  ;;  %337 = vmatprep.subr.bf16.mxu1 %v353_v7 }
  0x17   :  { %311 = vmatpush3.bf16.msra.mxu0 %v353_v7  ;;  %345 = vmatpush3.bf16.msra.mxu1 %v353_v7 }
  0x18   :  { %312 = vmatprep.subr.bf16.mxu0 %v354_v8  ;;  %338 = vmatprep.subr.bf16.mxu1 %v354_v8 }
  0x1b   :  { %313 = vmatpush3.bf16.msra.mxu0 %v354_v8  ;;  %346 = vmatpush3.bf16.msra.mxu1 %v354_v8 }
  0x1c   :  { %314 = vmatprep.subr.bf16.mxu0 %v355_v9  ;;  %339 = vmatprep.subr.bf16.mxu1 %v355_v9 }
  0x1f   :  { %315 = vmatpush3.bf16.msra.mxu0 %v355_v9  ;;  %347 = vmatpush3.bf16.msra.mxu1 %v355_v9 }
  0x22   :  { %317 = vmatmul.mubr.bf16.vlgmr.msra.gmra.mrb[0].mxu0 %v358_v10  ;;  %325 = vmatmul.mubr.bf16.vlgmr.msra.gmra.mrb[0].mxu1 %v359_v11 }
  0x23   :  { %320 = vmatprep.mubr.bf16.mxu0 %v360_v12  ;;  %328 = vmatprep.mubr.bf16.mxu1 %v361_v13 }
  0x2a   :  { %321 = vmatmul.mubr.bf16.gmra.mrb[4].mxu0 %v362_v14  ;;  %329 = vmatmul.mubr.bf16.gmra.mrb[4].mxu1 %v363_v15 }
  0xf5   :  { %v318_v17 = vpop.f32.mrb[0].mxu0  ;;  %v326_v18 = vpop.f32.mrb[0].mxu1 }
  0xf6   :  { %v193_v19 = vadd.f32 %v318_v17, %v267_v16  ;;  %v225_v20 = vadd.f32 %v326_v18, %v267_v16  ;;  %v184_v21 = vpop.f32.mrb[1].mxu0  ;;  %v216_v22 = vpop.f32.mrb[1].mxu1 }
  0xf7   :  { %v185_v23 = vadd.f32 %v267_v16, %v184_v21  ;;  %v217_v24 = vadd.f32 %v267_v16, %v216_v22  ;;  %v319_v25 = vpop.f32.mrb[2].mxu0  ;;  %v327_v26 = vpop.f32.mrb[2].mxu1 }
  0xf8   :  { %249 = vst [vmem:[%s486_s3 + $0x10] sm:$0xff] %v193_v19  ;;  %257 = vst [vmem:[%s486_s3 + $0x50] sm:$0xff] %v225_v20  ;;  %v196_v27 = vadd.f32 %v319_v25, %v267_v16  ;;  %v228_v28 = vadd.f32 %v327_v26, %v267_v16  ;;  %v187_v29 = vpop.f32.mrb[3].mxu0  ;;  %v219_v30 = vpop.f32.mrb[3].mxu1 }
  0xf9   :  { %247 = vst [vmem:[%s486_s3] sm:$0xff] %v185_v23  ;;  %255 = vst [vmem:[%s486_s3 + $0x40] sm:$0xff] %v217_v24  ;;  %v188_v31 = vadd.f32 %v267_v16, %v187_v29  ;;  %v220_v32 = vadd.f32 %v267_v16, %v219_v30 }
  0xfa   :  { %250 = vst [vmem:[%s486_s3 + $0x18] sm:$0xff] %v196_v27  ;;  %258 = vst [vmem:[%s486_s3 + $0x58] sm:$0xff] %v228_v28 }
  0xfb   :  { %248 = vst [vmem:[%s486_s3 + $0x8] sm:$0xff] %v188_v31  ;;  %256 = vst [vmem:[%s486_s3 + $0x48] sm:$0xff] %v220_v32 }
  0xfd   :  { %v322_v33 = vpop.f32.mrb[4].mxu0  ;;  %v330_v34 = vpop.f32.mrb[4].mxu1 }
  0xfe   :  { %v209_v35 = vadd.f32 %v322_v33, %v267_v16  ;;  %v241_v36 = vadd.f32 %v330_v34, %v267_v16  ;;  %v200_v37 = vpop.f32.mrb[5].mxu0  ;;  %v232_v38 = vpop.f32.mrb[5].mxu1 }
  0xff   :  { %v201_v39 = vadd.f32 %v267_v16, %v200_v37  ;;  %v233_v40 = vadd.f32 %v267_v16, %v232_v38  ;;  %v323_v41 = vpop.f32.mrb[6].mxu0  ;;  %v331_v42 = vpop.f32.mrb[6].mxu1 }
 0x100   :  { %253 = vst [vmem:[%s486_s3 + $0x30] sm:$0xff] %v209_v35  ;;  %261 = vst [vmem:[%s486_s3 + $0x70] sm:$0xff] %v241_v36  ;;  %v212_v43 = vadd.f32 %v323_v41, %v267_v16  ;;  %v244_v44 = vadd.f32 %v331_v42, %v267_v16  ;;  %v203_v45 = vpop.f32.mrb[7].mxu0  ;;  %v235_v46 = vpop.f32.mrb[7].mxu1 }
 0x101   :  { %251 = vst [vmem:[%s486_s3 + $0x20] sm:$0xff] %v201_v39  ;;  %259 = vst [vmem:[%s486_s3 + $0x60] sm:$0xff] %v233_v40  ;;  %v204_v47 = vadd.f32 %v267_v16, %v203_v45  ;;  %v236_v48 = vadd.f32 %v267_v16, %v235_v46 }
 0x102   :  { %254 = vst [vmem:[%s486_s3 + $0x38] sm:$0xff] %v212_v43  ;;  %262 = vst [vmem:[%s486_s3 + $0x78] sm:$0xff] %v244_v44 }
 0x103   :  { %252 = vst [vmem:[%s486_s3 + $0x28] sm:$0xff] %v204_v47  ;;  %260 = vst [vmem:[%s486_s3 + $0x68] sm:$0xff] %v236_v48 }

// kernel: _lambda_.4
= control target key start
LH: loop header
LB: loop body
LE: loop exit
PB: predicated region body
PF: predicated region fallthrough
CT: control target
= control target key end

     0   :  { %s1860_s1 = inlined_call_operand.vmem [shape: bf16[128,128], index: 1, kind: input, shape index: {}]   ;;  %s1861_s0 = inlined_call_operand.vmem [shape: bf16[512,128], index: 0, kind: input, shape index: {}]   ;;  %s1862_s2 = inlined_call_operand.vmem [shape: f32[1,128], index: 2, kind: input, shape index: {}]   ;;  %s1863_s3 = inlined_call_operand.vmem [shape: bf16[512,128], index: 3, kind: output, shape index: {}]  }
   0x1   :  { %v1515_v0 = vld [vmem:[%s1860_s1] sm:$0xff]   ;;  %v1516_v1 = vld [vmem:[%s1860_s1 + $0x8] sm:$0xff]   ;;  %v1517_v2 = vld [vmem:[%s1860_s1 + $0x10] sm:$0xff]  }
   0x2   :  { %1419 = vmatprep.subr.bf16.mxu0 %v1515_v0  ;;  %1499 = vmatprep.subr.bf16.mxu1 %v1515_v0  ;;  %v1518_v3 = vld [vmem:[%s1860_s1 + $0x18] sm:$0xff]   ;;  %v1523_v4 = vld [vmem:[%s1861_s0] sm:$0xff]   ;;  %v1520_v7 = vld [vmem:[%s1860_s1 + $0x28] sm:$0xff]  }
   0x3   :  { %1420 = vmatpush3.bf16.msra.mxu0 %v1515_v0  ;;  %1507 = vmatpush3.bf16.msra.mxu1 %v1515_v0  ;;  %v1524_v5 = vld [vmem:[%s1861_s0 + $0x80] sm:$0xff]   ;;  %v1521_v8 = vld [vmem:[%s1860_s1 + $0x30] sm:$0xff]   ;;  %v1522_v9 = vld [vmem:[%s1860_s1 + $0x38] sm:$0xff]  }
   0x4   :  { %1421 = vmatprep.subr.bf16.mxu0 %v1516_v1  ;;  %1500 = vmatprep.subr.bf16.mxu1 %v1516_v1  ;;  %v1519_v6 = vld [vmem:[%s1860_s1 + $0x20] sm:$0xff]   ;;  %v1525_v10 = vld [vmem:[%s1861_s0 + $0x8] sm:$0xff]   ;;  %v1527_v12 = vld [vmem:[%s1861_s0 + $0x10] sm:$0xff]  }
   0x5   :  { %1435 = vmatprep.mubr.bf16.mxu0 %v1523_v4  ;;  %1467 = vmatprep.mubr.bf16.mxu1 %v1524_v5  ;;  %v1526_v11 = vld [vmem:[%s1861_s0 + $0x88] sm:$0xff]   ;;  %v1528_v13 = vld [vmem:[%s1861_s0 + $0x90] sm:$0xff]   ;;  %v1529_v14 = vld [vmem:[%s1861_s0 + $0x18] sm:$0xff]  }
   0x6   :  { %v1530_v15 = vld [vmem:[%s1861_s0 + $0x98] sm:$0xff]   ;;  %v1531_v16 = vld [vmem:[%s1861_s0 + $0x20] sm:$0xff]   ;;  %v1533_v18 = vld [vmem:[%s1861_s0 + $0x28] sm:$0xff]  }
   0x7   :  { %1422 = vmatpush3.bf16.msra.mxu0 %v1516_v1  ;;  %1508 = vmatpush3.bf16.msra.mxu1 %v1516_v1  ;;  %v1532_v17 = vld [vmem:[%s1861_s0 + $0xa0] sm:$0xff]   ;;  %v1534_v19 = vld [vmem:[%s1861_s0 + $0xa8] sm:$0xff]   ;;  %v1535_v20 = vld [vmem:[%s1861_s0 + $0x30] sm:$0xff]  }
   0x8   :  { %1423 = vmatprep.subr.bf16.mxu0 %v1517_v2  ;;  %1501 = vmatprep.subr.bf16.mxu1 %v1517_v2  ;;  %v1536_v21 = vld [vmem:[%s1861_s0 + $0xb0] sm:$0xff]   ;;  %v1537_v22 = vld [vmem:[%s1861_s0 + $0x38] sm:$0xff]   ;;  %v1539_v24 = vld [vmem:[%s1861_s0 + $0x40] sm:$0xff]  }
   0x9   :  { %v1538_v23 = vld [vmem:[%s1861_s0 + $0xb8] sm:$0xff]   ;;  %v1540_v25 = vld [vmem:[%s1861_s0 + $0xc0] sm:$0xff]   ;;  %v1541_v26 = vld [vmem:[%s1861_s0 + $0x48] sm:$0xff]  }
   0xa   :  { %v1542_v27 = vld [vmem:[%s1861_s0 + $0xc8] sm:$0xff]   ;;  %v1543_v28 = vld [vmem:[%s1861_s0 + $0x50] sm:$0xff]   ;;  %v1545_v30 = vld [vmem:[%s1861_s0 + $0x58] sm:$0xff]  }
   0xb   :  { %1424 = vmatpush3.bf16.msra.mxu0 %v1517_v2  ;;  %1509 = vmatpush3.bf16.msra.mxu1 %v1517_v2  ;;  %v1544_v29 = vld [vmem:[%s1861_s0 + $0xd0] sm:$0xff]   ;;  %v1546_v31 = vld [vmem:[%s1861_s0 + $0xd8] sm:$0xff]   ;;  %v1547_v32 = vld [vmem:[%s1861_s0 + $0x60] sm:$0xff]  }
   0xc   :  { %1425 = vmatprep.subr.bf16.mxu0 %v1518_v3  ;;  %1502 = vmatprep.subr.bf16.mxu1 %v1518_v3  ;;  %v1548_v33 = vld [vmem:[%s1861_s0 + $0xe0] sm:$0xff]   ;;  %v1549_v34 = vld [vmem:[%s1861_s0 + $0x68] sm:$0xff]   ;;  %v1551_v36 = vld [vmem:[%s1861_s0 + $0x70] sm:$0xff]  }
   0xd   :  { %v1550_v35 = vld [vmem:[%s1861_s0 + $0xe8] sm:$0xff]   ;;  %v1552_v37 = vld [vmem:[%s1861_s0 + $0xf0] sm:$0xff]   ;;  %v1553_v38 = vld [vmem:[%s1861_s0 + $0x78] sm:$0xff]  }
   0xe   :  { %v1554_v39 = vld [vmem:[%s1861_s0 + $0xf8] sm:$0xff]   ;;  %v1698_v40 = vld [vmem:[%s1862_s2] ss:$0 sm:$0xff] }
   0xf   :  { %1426 = vmatpush3.bf16.msra.mxu0 %v1518_v3  ;;  %1510 = vmatpush3.bf16.msra.mxu1 %v1518_v3 }
  0x10   :  { %1427 = vmatprep.subr.bf16.mxu0 %v1519_v6  ;;  %1503 = vmatprep.subr.bf16.mxu1 %v1519_v6 }
  0x13   :  { %1428 = vmatpush3.bf16.msra.mxu0 %v1519_v6  ;;  %1511 = vmatpush3.bf16.msra.mxu1 %v1519_v6 }
  0x14   :  { %1429 = vmatprep.subr.bf16.mxu0 %v1520_v7  ;;  %1504 = vmatprep.subr.bf16.mxu1 %v1520_v7 }
  0x17   :  { %1430 = vmatpush3.bf16.msra.mxu0 %v1520_v7  ;;  %1512 = vmatpush3.bf16.msra.mxu1 %v1520_v7 }
  0x18   :  { %1431 = vmatprep.subr.bf16.mxu0 %v1521_v8  ;;  %1505 = vmatprep.subr.bf16.mxu1 %v1521_v8 }
  0x1b   :  { %1432 = vmatpush3.bf16.msra.mxu0 %v1521_v8  ;;  %1513 = vmatpush3.bf16.msra.mxu1 %v1521_v8 }
  0x1c   :  { %1433 = vmatprep.subr.bf16.mxu0 %v1522_v9  ;;  %1506 = vmatprep.subr.bf16.mxu1 %v1522_v9 }
  0x1f   :  { %1434 = vmatpush3.bf16.msra.mxu0 %v1522_v9  ;;  %1514 = vmatpush3.bf16.msra.mxu1 %v1522_v9 }
  0x22   :  { %1436 = vmatmul.mubr.bf16.vlgmr.msra.gmra.mrb[0].mxu0 %v1525_v10  ;;  %1468 = vmatmul.mubr.bf16.vlgmr.msra.gmra.mrb[0].mxu1 %v1526_v11 }
  0x23   :  { %1439 = vmatprep.mubr.bf16.mxu0 %v1527_v12  ;;  %1471 = vmatprep.mubr.bf16.mxu1 %v1528_v13 }
  0x2a   :  { %1440 = vmatmul.mubr.bf16.gmra.mrb[4].mxu0 %v1529_v14  ;;  %1472 = vmatmul.mubr.bf16.gmra.mrb[4].mxu1 %v1530_v15 }
  0x2b   :  { %1443 = vmatprep.mubr.bf16.mxu0 %v1531_v16  ;;  %1475 = vmatprep.mubr.bf16.mxu1 %v1532_v17 }
  0x32   :  { %1444 = vmatmul.mubr.bf16.gmra.mrb[8].mxu0 %v1533_v18  ;;  %1476 = vmatmul.mubr.bf16.gmra.mrb[8].mxu1 %v1534_v19 }
  0x33   :  { %1447 = vmatprep.mubr.bf16.mxu0 %v1535_v20  ;;  %1479 = vmatprep.mubr.bf16.mxu1 %v1536_v21 }
  0x3a   :  { %1448 = vmatmul.mubr.bf16.gmra.mrb[12].mxu0 %v1537_v22  ;;  %1480 = vmatmul.mubr.bf16.gmra.mrb[12].mxu1 %v1538_v23 }
  0x3b   :  { %1451 = vmatprep.mubr.bf16.mxu0 %v1539_v24  ;;  %1483 = vmatprep.mubr.bf16.mxu1 %v1540_v25 }
  0x42   :  { %1452 = vmatmul.mubr.bf16.gmra.mrb[16].mxu0 %v1541_v26  ;;  %1484 = vmatmul.mubr.bf16.gmra.mrb[16].mxu1 %v1542_v27 }
  0x43   :  { %1455 = vmatprep.mubr.bf16.mxu0 %v1543_v28  ;;  %1487 = vmatprep.mubr.bf16.mxu1 %v1544_v29 }
  0x4a   :  { %1456 = vmatmul.mubr.bf16.gmra.mrb[20].mxu0 %v1545_v30  ;;  %1488 = vmatmul.mubr.bf16.gmra.mrb[20].mxu1 %v1546_v31 }
  0x4b   :  { %1459 = vmatprep.mubr.bf16.mxu0 %v1547_v32  ;;  %1491 = vmatprep.mubr.bf16.mxu1 %v1548_v33 }
  0x52   :  { %1460 = vmatmul.mubr.bf16.gmra.mrb[24].mxu0 %v1549_v34  ;;  %1492 = vmatmul.mubr.bf16.gmra.mrb[24].mxu1 %v1550_v35 }
  0x53   :  { %1463 = vmatprep.mubr.bf16.mxu0 %v1551_v36  ;;  %1495 = vmatprep.mubr.bf16.mxu1 %v1552_v37 }
  0x5a   :  { %1464 = vmatmul.mubr.bf16.gmra.mrb[28].mxu0 %v1553_v38  ;;  %1496 = vmatmul.mubr.bf16.gmra.mrb[28].mxu1 %v1554_v39 }
  0xf5   :  { %v1437_v41 = vpop.f32.mrb[0].mxu0  ;;  %v1469_v42 = vpop.f32.mrb[0].mxu1 }
  0xf6   :  { %v385_v43 = vadd.f32 %v1437_v41, %v1698_v40  ;;  %v513_v44 = vadd.f32 %v1469_v42, %v1698_v40  ;;  %v376_v45 = vpop.f32.mrb[1].mxu0  ;;  %v504_v46 = vpop.f32.mrb[1].mxu1 }
  0xf7   :  { %v377_v47 = vadd.f32 %v1698_v40, %v376_v45  ;;  %v505_v48 = vadd.f32 %v1698_v40, %v504_v46  ;;  %v1438_v49 = vpop.f32.mrb[2].mxu0  ;;  %v1470_v50 = vpop.f32.mrb[2].mxu1 }
  0xf8   :  { %v388_v51 = vadd.f32 %v1438_v49, %v1698_v40  ;;  %v516_v52 = vadd.f32 %v1470_v50, %v1698_v40  ;;  %v379_v53 = vpop.f32.mrb[3].mxu0  ;;  %v507_v54 = vpop.f32.mrb[3].mxu1  ;;  %v633_v57 = vmax.f32 %v385_v43, 0.0  ;;  %v665_v58 = vmax.f32 %v513_v44, 0.0 }
  0xf9   :  { %v380_v55 = vadd.f32 %v1698_v40, %v379_v53  ;;  %v508_v56 = vadd.f32 %v1698_v40, %v507_v54  ;;  %v631_v61 = vmax.f32 %v377_v47, 0.0  ;;  %v663_v62 = vmax.f32 %v505_v48, 0.0 }
  0xfa   :  { %v634_v59 = vmax.f32 %v388_v51, 0.0  ;;  %v666_v60 = vmax.f32 %v516_v52, 0.0 }
  0xfb   :  { %v632_v63 = vmax.f32 %v380_v55, 0.0  ;;  %v664_v0 = vmax.f32 %v508_v56, 0.0 }
  0xfc   :  { %v1196_v1 = vpack.c.bf16 %v634_v59, %v633_v57  ;;  %v1276_v2 = vpack.c.bf16 %v666_v60, %v665_v58 }
  0xfd   :  { %v1191_v3 = vpack.c.bf16 %v632_v63, %v631_v61  ;;  %v1271_v4 = vpack.c.bf16 %v664_v0, %v663_v62  ;;  %v1441_v5 = vpop.f32.mrb[4].mxu0  ;;  %v1473_v6 = vpop.f32.mrb[4].mxu1 }
  0xfe   :  { %1348 = vst [vmem:[%s1863_s3 + $0x8] sm:$0xff] %v1196_v1   ;;  %1364 = vst [vmem:[%s1863_s3 + $0x88] sm:$0xff] %v1276_v2   ;;  %v401_v7 = vadd.f32 %v1441_v5, %v1698_v40  ;;  %v529_v8 = vadd.f32 %v1473_v6, %v1698_v40  ;;  %v392_v9 = vpop.f32.mrb[5].mxu0  ;;  %v520_v10 = vpop.f32.mrb[5].mxu1 }
  0xff   :  { %1192 = vst [vmem:[%s1863_s3] sm:$0xff] %v1191_v3   ;;  %1363 = vst [vmem:[%s1863_s3 + $0x80] sm:$0xff] %v1271_v4   ;;  %v393_v11 = vadd.f32 %v1698_v40, %v392_v9  ;;  %v521_v12 = vadd.f32 %v1698_v40, %v520_v10  ;;  %v1442_v13 = vpop.f32.mrb[6].mxu0  ;;  %v1474_v14 = vpop.f32.mrb[6].mxu1 }
 0x100   :  { %v404_v15 = vadd.f32 %v1442_v13, %v1698_v40  ;;  %v532_v16 = vadd.f32 %v1474_v14, %v1698_v40  ;;  %v395_v17 = vpop.f32.mrb[7].mxu0  ;;  %v523_v18 = vpop.f32.mrb[7].mxu1  ;;  %v637_v21 = vmax.f32 %v401_v7, 0.0  ;;  %v669_v22 = vmax.f32 %v529_v8, 0.0 }
 0x101   :  { %v396_v19 = vadd.f32 %v1698_v40, %v395_v17  ;;  %v524_v20 = vadd.f32 %v1698_v40, %v523_v18  ;;  %v635_v25 = vmax.f32 %v393_v11, 0.0  ;;  %v667_v26 = vmax.f32 %v521_v12, 0.0 }
 0x102   :  { %v638_v23 = vmax.f32 %v404_v15, 0.0  ;;  %v670_v24 = vmax.f32 %v532_v16, 0.0 }
 0x103   :  { %v636_v27 = vmax.f32 %v396_v19, 0.0  ;;  %v668_v28 = vmax.f32 %v524_v20, 0.0 }
 0x104   :  { %v1206_v29 = vpack.c.bf16 %v638_v23, %v637_v21  ;;  %v1286_v30 = vpack.c.bf16 %v670_v24, %v669_v22 }
 0x105   :  { %v1201_v31 = vpack.c.bf16 %v636_v27, %v635_v25  ;;  %v1281_v32 = vpack.c.bf16 %v668_v28, %v667_v26  ;;  %v1445_v33 = vpop.f32.mrb[8].mxu0  ;;  %v1477_v34 = vpop.f32.mrb[8].mxu1 }
 0x106   :  { %1350 = vst [vmem:[%s1863_s3 + $0x18] sm:$0xff] %v1206_v29   ;;  %1366 = vst [vmem:[%s1863_s3 + $0x98] sm:$0xff] %v1286_v30   ;;  %v417_v35 = vadd.f32 %v1445_v33, %v1698_v40  ;;  %v545_v36 = vadd.f32 %v1477_v34, %v1698_v40  ;;  %v408_v37 = vpop.f32.mrb[9].mxu0  ;;  %v536_v38 = vpop.f32.mrb[9].mxu1 }
 0x107   :  { %1349 = vst [vmem:[%s1863_s3 + $0x10] sm:$0xff] %v1201_v31   ;;  %1365 = vst [vmem:[%s1863_s3 + $0x90] sm:$0xff] %v1281_v32   ;;  %v409_v39 = vadd.f32 %v1698_v40, %v408_v37  ;;  %v537_v41 = vadd.f32 %v1698_v40, %v536_v38  ;;  %v1446_v42 = vpop.f32.mrb[10].mxu0  ;;  %v1478_v43 = vpop.f32.mrb[10].mxu1 }
 0x108   :  { %v420_v44 = vadd.f32 %v1446_v42, %v1698_v40  ;;  %v548_v45 = vadd.f32 %v1478_v43, %v1698_v40  ;;  %v411_v46 = vpop.f32.mrb[11].mxu0  ;;  %v539_v47 = vpop.f32.mrb[11].mxu1  ;;  %v641_v50 = vmax.f32 %v417_v35, 0.0  ;;  %v673_v51 = vmax.f32 %v545_v36, 0.0 }
 0x109   :  { %v412_v48 = vadd.f32 %v1698_v40, %v411_v46  ;;  %v540_v49 = vadd.f32 %v1698_v40, %v539_v47  ;;  %v639_v54 = vmax.f32 %v409_v39, 0.0  ;;  %v671_v55 = vmax.f32 %v537_v41, 0.0 }
 0x10a   :  { %v642_v52 = vmax.f32 %v420_v44, 0.0  ;;  %v674_v53 = vmax.f32 %v548_v45, 0.0 }
 0x10b   :  { %v640_v56 = vmax.f32 %v412_v48, 0.0  ;;  %v672_v57 = vmax.f32 %v540_v49, 0.0 }
 0x10c   :  { %v1216_v58 = vpack.c.bf16 %v642_v52, %v641_v50  ;;  %v1296_v59 = vpack.c.bf16 %v674_v53, %v673_v51 }
 0x10d   :  { %v1211_v60 = vpack.c.bf16 %v640_v56, %v639_v54  ;;  %v1291_v61 = vpack.c.bf16 %v672_v57, %v671_v55  ;;  %v1449_v62 = vpop.f32.mrb[12].mxu0  ;;  %v1481_v63 = vpop.f32.mrb[12].mxu1 }
 0x10e   :  { %1352 = vst [vmem:[%s1863_s3 + $0x28] sm:$0xff] %v1216_v58   ;;  %1368 = vst [vmem:[%s1863_s3 + $0xa8] sm:$0xff] %v1296_v59   ;;  %v433_v0 = vadd.f32 %v1449_v62, %v1698_v40  ;;  %v561_v1 = vadd.f32 %v1481_v63, %v1698_v40  ;;  %v424_v2 = vpop.f32.mrb[13].mxu0  ;;  %v552_v3 = vpop.f32.mrb[13].mxu1 }
 0x10f   :  { %1351 = vst [vmem:[%s1863_s3 + $0x20] sm:$0xff] %v1211_v60   ;;  %1367 = vst [vmem:[%s1863_s3 + $0xa0] sm:$0xff] %v1291_v61   ;;  %v425_v4 = vadd.f32 %v1698_v40, %v424_v2  ;;  %v553_v5 = vadd.f32 %v1698_v40, %v552_v3  ;;  %v1450_v6 = vpop.f32.mrb[14].mxu0  ;;  %v1482_v7 = vpop.f32.mrb[14].mxu1 }
 0x110   :  { %v436_v8 = vadd.f32 %v1450_v6, %v1698_v40  ;;  %v564_v9 = vadd.f32 %v1482_v7, %v1698_v40  ;;  %v427_v10 = vpop.f32.mrb[15].mxu0  ;;  %v555_v11 = vpop.f32.mrb[15].mxu1  ;;  %v645_v14 = vmax.f32 %v433_v0, 0.0  ;;  %v677_v15 = vmax.f32 %v561_v1, 0.0 }
 0x111   :  { %v428_v12 = vadd.f32 %v1698_v40, %v427_v10  ;;  %v556_v13 = vadd.f32 %v1698_v40, %v555_v11  ;;  %v643_v18 = vmax.f32 %v425_v4, 0.0  ;;  %v675_v19 = vmax.f32 %v553_v5, 0.0 }
 0x112   :  { %v646_v16 = vmax.f32 %v436_v8, 0.0  ;;  %v678_v17 = vmax.f32 %v564_v9, 0.0 }
 0x113   :  { %v644_v20 = vmax.f32 %v428_v12, 0.0  ;;  %v676_v21 = vmax.f32 %v556_v13, 0.0 }
 0x114   :  { %v1226_v22 = vpack.c.bf16 %v646_v16, %v645_v14  ;;  %v1306_v23 = vpack.c.bf16 %v678_v17, %v677_v15 }
 0x115   :  { %v1221_v24 = vpack.c.bf16 %v644_v20, %v643_v18  ;;  %v1301_v25 = vpack.c.bf16 %v676_v21, %v675_v19  ;;  %v1453_v26 = vpop.f32.mrb[16].mxu0  ;;  %v1485_v27 = vpop.f32.mrb[16].mxu1 }
 0x116   :  { %1354 = vst [vmem:[%s1863_s3 + $0x38] sm:$0xff] %v1226_v22   ;;  %1370 = vst [vmem:[%s1863_s3 + $0xb8] sm:$0xff] %v1306_v23   ;;  %v449_v28 = vadd.f32 %v1453_v26, %v1698_v40  ;;  %v577_v29 = vadd.f32 %v1485_v27, %v1698_v40  ;;  %v440_v30 = vpop.f32.mrb[17].mxu0  ;;  %v568_v31 = vpop.f32.mrb[17].mxu1 }
 0x117   :  { %1353 = vst [vmem:[%s1863_s3 + $0x30] sm:$0xff] %v1221_v24   ;;  %1369 = vst [vmem:[%s1863_s3 + $0xb0] sm:$0xff] %v1301_v25   ;;  %v441_v32 = vadd.f32 %v1698_v40, %v440_v30  ;;  %v569_v33 = vadd.f32 %v1698_v40, %v568_v31  ;;  %v1454_v34 = vpop.f32.mrb[18].mxu0  ;;  %v1486_v35 = vpop.f32.mrb[18].mxu1 }
 0x118   :  { %v452_v36 = vadd.f32 %v1454_v34, %v1698_v40  ;;  %v580_v37 = vadd.f32 %v1486_v35, %v1698_v40  ;;  %v443_v38 = vpop.f32.mrb[19].mxu0  ;;  %v571_v39 = vpop.f32.mrb[19].mxu1  ;;  %v649_v43 = vmax.f32 %v449_v28, 0.0  ;;  %v681_v44 = vmax.f32 %v577_v29, 0.0 }
 0x119   :  { %v444_v41 = vadd.f32 %v1698_v40, %v443_v38  ;;  %v572_v42 = vadd.f32 %v1698_v40, %v571_v39  ;;  %v647_v47 = vmax.f32 %v441_v32, 0.0  ;;  %v679_v48 = vmax.f32 %v569_v33, 0.0 }
 0x11a   :  { %v650_v45 = vmax.f32 %v452_v36, 0.0  ;;  %v682_v46 = vmax.f32 %v580_v37, 0.0 }
 0x11b   :  { %v648_v49 = vmax.f32 %v444_v41, 0.0  ;;  %v680_v50 = vmax.f32 %v572_v42, 0.0 }
 0x11c   :  { %v1236_v51 = vpack.c.bf16 %v650_v45, %v649_v43  ;;  %v1316_v52 = vpack.c.bf16 %v682_v46, %v681_v44 }
 0x11d   :  { %v1231_v53 = vpack.c.bf16 %v648_v49, %v647_v47  ;;  %v1311_v54 = vpack.c.bf16 %v680_v50, %v679_v48  ;;  %v1457_v55 = vpop.f32.mrb[20].mxu0  ;;  %v1489_v56 = vpop.f32.mrb[20].mxu1 }
 0x11e   :  { %1356 = vst [vmem:[%s1863_s3 + $0x48] sm:$0xff] %v1236_v51   ;;  %1372 = vst [vmem:[%s1863_s3 + $0xc8] sm:$0xff] %v1316_v52   ;;  %v465_v57 = vadd.f32 %v1457_v55, %v1698_v40  ;;  %v593_v58 = vadd.f32 %v1489_v56, %v1698_v40  ;;  %v456_v59 = vpop.f32.mrb[21].mxu0  ;;  %v584_v60 = vpop.f32.mrb[21].mxu1 }
 0x11f   :  { %1355 = vst [vmem:[%s1863_s3 + $0x40] sm:$0xff] %v1231_v53   ;;  %1371 = vst [vmem:[%s1863_s3 + $0xc0] sm:$0xff] %v1311_v54   ;;  %v457_v61 = vadd.f32 %v1698_v40, %v456_v59  ;;  %v585_v62 = vadd.f32 %v1698_v40, %v584_v60  ;;  %v1458_v63 = vpop.f32.mrb[22].mxu0  ;;  %v1490_v0 = vpop.f32.mrb[22].mxu1 }
 0x120   :  { %v468_v1 = vadd.f32 %v1458_v63, %v1698_v40  ;;  %v596_v2 = vadd.f32 %v1490_v0, %v1698_v40  ;;  %v459_v3 = vpop.f32.mrb[23].mxu0  ;;  %v587_v4 = vpop.f32.mrb[23].mxu1  ;;  %v653_v7 = vmax.f32 %v465_v57, 0.0  ;;  %v685_v8 = vmax.f32 %v593_v58, 0.0 }
 0x121   :  { %v460_v5 = vadd.f32 %v1698_v40, %v459_v3  ;;  %v588_v6 = vadd.f32 %v1698_v40, %v587_v4  ;;  %v651_v11 = vmax.f32 %v457_v61, 0.0  ;;  %v683_v12 = vmax.f32 %v585_v62, 0.0 }
 0x122   :  { %v654_v9 = vmax.f32 %v468_v1, 0.0  ;;  %v686_v10 = vmax.f32 %v596_v2, 0.0 }
 0x123   :  { %v652_v13 = vmax.f32 %v460_v5, 0.0  ;;  %v684_v14 = vmax.f32 %v588_v6, 0.0 }
 0x124   :  { %v1246_v15 = vpack.c.bf16 %v654_v9, %v653_v7  ;;  %v1326_v16 = vpack.c.bf16 %v686_v10, %v685_v8 }
 0x125   :  { %v1241_v17 = vpack.c.bf16 %v652_v13, %v651_v11  ;;  %v1321_v18 = vpack.c.bf16 %v684_v14, %v683_v12  ;;  %v1461_v19 = vpop.f32.mrb[24].mxu0  ;;  %v1493_v20 = vpop.f32.mrb[24].mxu1 }
 0x126   :  { %1358 = vst [vmem:[%s1863_s3 + $0x58] sm:$0xff] %v1246_v15   ;;  %1374 = vst [vmem:[%s1863_s3 + $0xd8] sm:$0xff] %v1326_v16   ;;  %v481_v21 = vadd.f32 %v1461_v19, %v1698_v40  ;;  %v609_v22 = vadd.f32 %v1493_v20, %v1698_v40  ;;  %v472_v23 = vpop.f32.mrb[25].mxu0  ;;  %v600_v24 = vpop.f32.mrb[25].mxu1 }
 0x127   :  { %1357 = vst [vmem:[%s1863_s3 + $0x50] sm:$0xff] %v1241_v17   ;;  %1373 = vst [vmem:[%s1863_s3 + $0xd0] sm:$0xff] %v1321_v18   ;;  %v473_v25 = vadd.f32 %v1698_v40, %v472_v23  ;;  %v601_v26 = vadd.f32 %v1698_v40, %v600_v24  ;;  %v1462_v27 = vpop.f32.mrb[26].mxu0  ;;  %v1494_v28 = vpop.f32.mrb[26].mxu1 }
 0x128   :  { %v484_v29 = vadd.f32 %v1462_v27, %v1698_v40  ;;  %v612_v30 = vadd.f32 %v1494_v28, %v1698_v40  ;;  %v475_v31 = vpop.f32.mrb[27].mxu0  ;;  %v603_v32 = vpop.f32.mrb[27].mxu1  ;;  %v657_v35 = vmax.f32 %v481_v21, 0.0  ;;  %v689_v36 = vmax.f32 %v609_v22, 0.0 }
 0x129   :  { %v476_v33 = vadd.f32 %v1698_v40, %v475_v31  ;;  %v604_v34 = vadd.f32 %v1698_v40, %v603_v32  ;;  %v655_v39 = vmax.f32 %v473_v25, 0.0  ;;  %v687_v41 = vmax.f32 %v601_v26, 0.0 }
 0x12a   :  { %v658_v37 = vmax.f32 %v484_v29, 0.0  ;;  %v690_v38 = vmax.f32 %v612_v30, 0.0 }
 0x12b   :  { %v656_v42 = vmax.f32 %v476_v33, 0.0  ;;  %v688_v43 = vmax.f32 %v604_v34, 0.0 }
 0x12c   :  { %v1256_v44 = vpack.c.bf16 %v658_v37, %v657_v35  ;;  %v1336_v45 = vpack.c.bf16 %v690_v38, %v689_v36 }
 0x12d   :  { %v1251_v46 = vpack.c.bf16 %v656_v42, %v655_v39  ;;  %v1331_v47 = vpack.c.bf16 %v688_v43, %v687_v41  ;;  %v1465_v48 = vpop.f32.mrb[28].mxu0  ;;  %v1497_v49 = vpop.f32.mrb[28].mxu1 }
 0x12e   :  { %1360 = vst [vmem:[%s1863_s3 + $0x68] sm:$0xff] %v1256_v44   ;;  %1376 = vst [vmem:[%s1863_s3 + $0xe8] sm:$0xff] %v1336_v45   ;;  %v497_v50 = vadd.f32 %v1465_v48, %v1698_v40  ;;  %v625_v51 = vadd.f32 %v1497_v49, %v1698_v40  ;;  %v488_v52 = vpop.f32.mrb[29].mxu0  ;;  %v616_v53 = vpop.f32.mrb[29].mxu1 }
 0x12f   :  { %1359 = vst [vmem:[%s1863_s3 + $0x60] sm:$0xff] %v1251_v46   ;;  %1375 = vst [vmem:[%s1863_s3 + $0xe0] sm:$0xff] %v1331_v47   ;;  %v489_v54 = vadd.f32 %v1698_v40, %v488_v52  ;;  %v617_v55 = vadd.f32 %v1698_v40, %v616_v53  ;;  %v1466_v56 = vpop.f32.mrb[30].mxu0  ;;  %v1498_v57 = vpop.f32.mrb[30].mxu1 }
 0x130   :  { %v500_v58 = vadd.f32 %v1466_v56, %v1698_v40  ;;  %v628_v59 = vadd.f32 %v1498_v57, %v1698_v40  ;;  %v491_v60 = vpop.f32.mrb[31].mxu0  ;;  %v619_v61 = vpop.f32.mrb[31].mxu1  ;;  %v661_v0 = vmax.f32 %v497_v50, 0.0  ;;  %v693_v1 = vmax.f32 %v625_v51, 0.0 }
 0x131   :  { %v492_v62 = vadd.f32 %v1698_v40, %v491_v60  ;;  %v620_v63 = vadd.f32 %v1698_v40, %v619_v61  ;;  %v659_v4 = vmax.f32 %v489_v54, 0.0  ;;  %v691_v5 = vmax.f32 %v617_v55, 0.0 }
 0x132   :  { %v662_v2 = vmax.f32 %v500_v58, 0.0  ;;  %v694_v3 = vmax.f32 %v628_v59, 0.0 }
 0x133   :  { %v660_v6 = vmax.f32 %v492_v62, 0.0  ;;  %v692_v7 = vmax.f32 %v620_v63, 0.0 }
 0x134   :  { %v1266_v8 = vpack.c.bf16 %v662_v2, %v661_v0  ;;  %v1346_v9 = vpack.c.bf16 %v694_v3, %v693_v1 }
 0x135   :  { %v1261_v10 = vpack.c.bf16 %v660_v6, %v659_v4  ;;  %v1341_v11 = vpack.c.bf16 %v692_v7, %v691_v5 }
 0x136   :  { %1362 = vst [vmem:[%s1863_s3 + $0x78] sm:$0xff] %v1266_v8   ;;  %1378 = vst [vmem:[%s1863_s3 + $0xf8] sm:$0xff] %v1346_v9  }
 0x137   :  { %1361 = vst [vmem:[%s1863_s3 + $0x70] sm:$0xff] %v1261_v10   ;;  %1377 = vst [vmem:[%s1863_s3 + $0xf0] sm:$0xff] %v1341_v11  }

// kernel: _lambda_.7
= control target key start
LH: loop header
LB: loop body
LE: loop exit
PB: predicated region body
PF: predicated region fallthrough
CT: control target
= control target key end

     0   :  { %s612_s0 = inlined_call_operand.vmem [shape: bf16[128,128], index: 0, kind: input, shape index: {}]   ;;  %s613_s1 = inlined_call_operand.vmem [shape: bf16[128,128], index: 1, kind: input, shape index: {}]   ;;  %s614_s2 = inlined_call_operand.vmem [shape: f32[1,128], index: 2, kind: input, shape index: {}]   ;;  %s615_s3 = inlined_call_operand.vmem [shape: f32[128,128], index: 3, kind: input, shape index: {}]   ;;  %s616_s4 = inlined_call_operand.hbm [shape: f32[128,128], index: 4, kind: output, shape index: {}]  }
   0x1   :  { %v415_v0 = vld [vmem:[%s613_s1] sm:$0xff]   ;;  %v416_v1 = vld [vmem:[%s613_s1 + $0x8] sm:$0xff]   ;;  %v417_v2 = vld [vmem:[%s613_s1 + $0x10] sm:$0xff]  }
   0x2   :  { %364 = vmatprep.subr.bf16.mxu0 %v415_v0  ;;  %396 = vmatprep.subr.bf16.mxu1 %v415_v0  ;;  %v418_v3 = vld [vmem:[%s613_s1 + $0x18] sm:$0xff]   ;;  %v423_v4 = vld [vmem:[%s612_s0] sm:$0xff]   ;;  %v420_v7 = vld [vmem:[%s613_s1 + $0x28] sm:$0xff]  }
   0x3   :  { %365 = vmatpush3.bf16.msra.mxu0 %v415_v0  ;;  %404 = vmatpush3.bf16.msra.mxu1 %v415_v0  ;;  %v424_v5 = vld [vmem:[%s612_s0 + $0x20] sm:$0xff]  }
   0x4   :  { %366 = vmatprep.subr.bf16.mxu0 %v416_v1  ;;  %397 = vmatprep.subr.bf16.mxu1 %v416_v1  ;;  %v419_v6 = vld [vmem:[%s613_s1 + $0x20] sm:$0xff]  }
   0x5   :  { %380 = vmatprep.mubr.bf16.mxu0 %v423_v4  ;;  %388 = vmatprep.mubr.bf16.mxu1 %v424_v5 }
   0x7   :  { %367 = vmatpush3.bf16.msra.mxu0 %v416_v1  ;;  %405 = vmatpush3.bf16.msra.mxu1 %v416_v1 }
   0x8   :  { %368 = vmatprep.subr.bf16.mxu0 %v417_v2  ;;  %398 = vmatprep.subr.bf16.mxu1 %v417_v2 }
   0xb   :  { %369 = vmatpush3.bf16.msra.mxu0 %v417_v2  ;;  %406 = vmatpush3.bf16.msra.mxu1 %v417_v2 }
   0xc   :  { %370 = vmatprep.subr.bf16.mxu0 %v418_v3  ;;  %399 = vmatprep.subr.bf16.mxu1 %v418_v3 }
   0xf   :  { %371 = vmatpush3.bf16.msra.mxu0 %v418_v3  ;;  %407 = vmatpush3.bf16.msra.mxu1 %v418_v3 }
  0x10   :  { %372 = vmatprep.subr.bf16.mxu0 %v419_v6  ;;  %400 = vmatprep.subr.bf16.mxu1 %v419_v6 }
  0x11   :  { %9 = vsyncpa [#allocation3], 0  ;;  %v421_v8 = vld [vmem:[%s613_s1 + $0x30] sm:$0xff]   ;;  %v422_v9 = vld [vmem:[%s613_s1 + $0x38] sm:$0xff]   ;;  %s455_s25 = smov [#allocation2]  }
  0x12   :  { %v425_v10 = vld [vmem:[%s612_s0 + $0x8] sm:$0xff]   ;;  %v427_v12 = vld [vmem:[%s612_s0 + $0x10] sm:$0xff]   ;;  %v429_v14 = vld [vmem:[%s612_s0 + $0x18] sm:$0xff]  }
  0x13   :  { %373 = vmatpush3.bf16.msra.mxu0 %v419_v6  ;;  %408 = vmatpush3.bf16.msra.mxu1 %v419_v6  ;;  %v426_v11 = vld [vmem:[%s612_s0 + $0x28] sm:$0xff]   ;;  %v428_v13 = vld [vmem:[%s612_s0 + $0x30] sm:$0xff]   ;;  %v430_v15 = vld [vmem:[%s612_s0 + $0x38] sm:$0xff]   ;;  %s320_s0 = sshll.u32 %s455_s25, 4  ;;  %s321_s0 = int_to_ptr.vmem [resolvable:$true] %s320_s0 }
  0x14   :  { %374 = vmatprep.subr.bf16.mxu0 %v420_v7  ;;  %401 = vmatprep.subr.bf16.mxu1 %v420_v7  ;;  %v534_v16 = vld [vmem:[%s614_s2] ss:$0 sm:$0xff]  ;;  %v253_v18 = vld [vmem:[%s615_s3 + $0x10] sm:$0xff]  ;;  %v254_v30 = vld [vmem:[%s615_s3 + $0x18] sm:$0xff]  ;;  %p436_p1 = scmp.lt.s32.totalorder %s321_s0, %s321_s0 }
  0x15   :  { %v261_v20 = vld [vmem:[%s615_s3 + $0x50] sm:$0xff]  ;;  %v251_v24 = vld [vmem:[%s615_s3] sm:$0xff]  ;;  %v262_v32 = vld [vmem:[%s615_s3 + $0x58] sm:$0xff] }
  0x16   :  { %v259_v26 = vld [vmem:[%s615_s3 + $0x40] sm:$0xff]  ;;  %v252_v38 = vld [vmem:[%s615_s3 + $0x8] sm:$0xff]  ;;  %v257_v58 = vld [vmem:[%s615_s3 + $0x30] sm:$0xff] }
  0x17   :  { %375 = vmatpush3.bf16.msra.mxu0 %v420_v7  ;;  %409 = vmatpush3.bf16.msra.mxu1 %v420_v7  ;;  %v260_v40 = vld [vmem:[%s615_s3 + $0x48] sm:$0xff]  ;;  %v265_v60 = vld [vmem:[%s615_s3 + $0x70] sm:$0xff]  ;;  %v255_v0 = vld [vmem:[%s615_s3 + $0x20] sm:$0xff] }
  0x18   :  { %376 = vmatprep.subr.bf16.mxu0 %v421_v8  ;;  %402 = vmatprep.subr.bf16.mxu1 %v421_v8  ;;  %v263_v2 = vld [vmem:[%s615_s3 + $0x60] sm:$0xff]  ;;  %v258_v6 = vld [vmem:[%s615_s3 + $0x38] sm:$0xff] }
  0x1b   :  { %377 = vmatpush3.bf16.msra.mxu0 %v421_v8  ;;  %410 = vmatpush3.bf16.msra.mxu1 %v421_v8  ;;  %v266_v8 = vld [vmem:[%s615_s3 + $0x78] sm:$0xff] }
  0x1c   :  { %378 = vmatprep.subr.bf16.mxu0 %v422_v9  ;;  %403 = vmatprep.subr.bf16.mxu1 %v422_v9 }
  0x1f   :  { %379 = vmatpush3.bf16.msra.mxu0 %v422_v9  ;;  %411 = vmatpush3.bf16.msra.mxu1 %v422_v9 }
  0x22   :  { %381 = vmatmul.mubr.bf16.vlgmr.msra.gmra.mrb[0].mxu0 %v425_v10  ;;  %389 = vmatmul.mubr.bf16.vlgmr.msra.gmra.mrb[0].mxu1 %v426_v11 }
  0x23   :  { %384 = vmatprep.mubr.bf16.mxu0 %v427_v12  ;;  %392 = vmatprep.mubr.bf16.mxu1 %v428_v13 }
  0x2a   :  { %385 = vmatmul.mubr.bf16.gmra.mrb[4].mxu0 %v429_v14  ;;  %393 = vmatmul.mubr.bf16.gmra.mrb[4].mxu1 %v430_v15  ;;  %v256_v14 = vld [vmem:[%s615_s3 + $0x28] sm:$0xff] }
  0xf5   :  { %v382_v17 = vpop.f32.mrb[0].mxu0  ;;  %v390_v19 = vpop.f32.mrb[0].mxu1 }
  0xf6   :  { %v197_v21 = vadd.f32 %v382_v17, %v534_v16  ;;  %v229_v22 = vadd.f32 %v390_v19, %v534_v16  ;;  %v188_v23 = vpop.f32.mrb[1].mxu0  ;;  %v220_v25 = vpop.f32.mrb[1].mxu1  ;;  %v264_v17 = vld [vmem:[%s615_s3 + $0x68] sm:$0xff]  ;;  %s431_s3 = scalar_lea.vmem %s321_s0, 2048 }
  0xf7   :  { %v189_v27 = vadd.f32 %v534_v16, %v188_v23  ;;  %v221_v28 = vadd.f32 %v534_v16, %v220_v25  ;;  %v383_v29 = vpop.f32.mrb[2].mxu0  ;;  %v391_v31 = vpop.f32.mrb[2].mxu1  ;;  %p432_p0 = scmp.ne.s32.totalorder %s321_s0, %s431_s3  ;;  %p437_p2 = scmp.lt.s32.totalorder %s431_s3, %s431_s3 }
  0xf8   :  { %v269_v33 = vadd.f32 %v253_v18, %v197_v21  ;;  %v277_v34 = vadd.f32 %v261_v20, %v229_v22  ;;  %v200_v35 = vadd.f32 %v383_v29, %v534_v16  ;;  %v232_v36 = vadd.f32 %v391_v31, %v534_v16  ;;  %v191_v37 = vpop.f32.mrb[3].mxu0  ;;  %v223_v39 = vpop.f32.mrb[3].mxu1 }
  0xf9   :  { %v267_v41 = vadd.f32 %v251_v24, %v189_v27  ;;  %v275_v42 = vadd.f32 %v259_v26, %v221_v28  ;;  %v192_v43 = vadd.f32 %v534_v16, %v191_v37  ;;  %v224_v44 = vadd.f32 %v534_v16, %v223_v39  ;;  %p438_p3 = por %p437_p2, %p436_p1 }
  0xfa   :  { %v285_v45 = vmax.f32 %v269_v33, 0.0  ;;  %v293_v46 = vmax.f32 %v277_v34, 0.0  ;;  %v270_v47 = vadd.f32 %v254_v30, %v200_v35  ;;  %v278_v48 = vadd.f32 %v262_v32, %v232_v36 }
  0xfb   :  { %v283_v49 = vmax.f32 %v267_v41, 0.0  ;;  %v291_v50 = vmax.f32 %v275_v42, 0.0  ;;  %v268_v51 = vadd.f32 %v252_v38, %v192_v43  ;;  %v276_v52 = vadd.f32 %v260_v40, %v224_v44  ;;  %p439_p4 = pnand %p438_p3, %p432_p0 }
  0xfc   :  { %301 = vst [vmem:[#allocation2 + $0x10] sm:$0xff] %v285_v45  ;;  %309 = vst [vmem:[#allocation2 + $0x50] sm:$0xff] %v293_v46  ;;  %v286_v53 = vmax.f32 %v270_v47, 0.0  ;;  %v294_v54 = vmax.f32 %v278_v48, 0.0 }
  0xfd   :  { %299 = vst [vmem:[#allocation2] sm:$0xff] %v283_v49  ;;  %307 = vst [vmem:[#allocation2 + $0x40] sm:$0xff] %v291_v50  ;;  %v284_v55 = vmax.f32 %v268_v51, 0.0  ;;  %v292_v56 = vmax.f32 %v276_v52, 0.0  ;;  %v386_v57 = vpop.f32.mrb[4].mxu0  ;;  %v394_v59 = vpop.f32.mrb[4].mxu1 }
  0xfe   :  { %302 = vst [vmem:[#allocation2 + $0x18] sm:$0xff] %v286_v53  ;;  %310 = vst [vmem:[#allocation2 + $0x58] sm:$0xff] %v294_v54  ;;  %v213_v61 = vadd.f32 %v386_v57, %v534_v16  ;;  %v245_v62 = vadd.f32 %v394_v59, %v534_v16  ;;  %v204_v63 = vpop.f32.mrb[5].mxu0  ;;  %v236_v1 = vpop.f32.mrb[5].mxu1 }
  0xff   :  { %300 = vst [vmem:[#allocation2 + $0x8] sm:$0xff] %v284_v55  ;;  %308 = vst [vmem:[#allocation2 + $0x48] sm:$0xff] %v292_v56  ;;  %v205_v3 = vadd.f32 %v534_v16, %v204_v63  ;;  %v237_v4 = vadd.f32 %v534_v16, %v236_v1  ;;  %v387_v5 = vpop.f32.mrb[6].mxu0  ;;  %v395_v7 = vpop.f32.mrb[6].mxu1 }
 0x100   :  { %v273_v9 = vadd.f32 %v257_v58, %v213_v61  ;;  %v281_v10 = vadd.f32 %v265_v60, %v245_v62  ;;  %v216_v11 = vadd.f32 %v387_v5, %v534_v16  ;;  %v248_v12 = vadd.f32 %v395_v7, %v534_v16  ;;  %v207_v13 = vpop.f32.mrb[7].mxu0  ;;  %v239_v15 = vpop.f32.mrb[7].mxu1 }
 0x101   :  { %v271_v18 = vadd.f32 %v255_v0, %v205_v3  ;;  %v279_v19 = vadd.f32 %v263_v2, %v237_v4  ;;  %v208_v20 = vadd.f32 %v534_v16, %v207_v13  ;;  %v240_v21 = vadd.f32 %v534_v16, %v239_v15 }
 0x102   :  { %v289_v22 = vmax.f32 %v273_v9, 0.0  ;;  %v297_v23 = vmax.f32 %v281_v10, 0.0  ;;  %v274_v24 = vadd.f32 %v258_v6, %v216_v11  ;;  %v282_v25 = vadd.f32 %v266_v8, %v248_v12 }
 0x103   :  { %v287_v26 = vmax.f32 %v271_v18, 0.0  ;;  %v295_v27 = vmax.f32 %v279_v19, 0.0  ;;  %v272_v28 = vadd.f32 %v256_v14, %v208_v20  ;;  %v280_v29 = vadd.f32 %v264_v17, %v240_v21 }
 0x104   :  { %305 = vst [vmem:[#allocation2 + $0x30] sm:$0xff] %v289_v22  ;;  %313 = vst [vmem:[#allocation2 + $0x70] sm:$0xff] %v297_v23  ;;  %v290_v30 = vmax.f32 %v274_v24, 0.0  ;;  %v298_v31 = vmax.f32 %v282_v25, 0.0 }
 0x105   :  { %303 = vst [vmem:[#allocation2 + $0x20] sm:$0xff] %v287_v26  ;;  %311 = vst [vmem:[#allocation2 + $0x60] sm:$0xff] %v295_v27  ;;  %v288_v32 = vmax.f32 %v272_v28, 0.0  ;;  %v296_v33 = vmax.f32 %v280_v29, 0.0 }
 0x106   :  { %306 = vst [vmem:[#allocation2 + $0x38] sm:$0xff] %v290_v30  ;;  %314 = vst [vmem:[#allocation2 + $0x78] sm:$0xff] %v298_v31 }
 0x107   :  { %304 = vst [vmem:[#allocation2 + $0x28] sm:$0xff] %v288_v32  ;;  %312 = vst [vmem:[#allocation2 + $0x68] sm:$0xff] %v296_v33 }
 0x108   :  { %442 = shalt.err (!%p439_p4)
}
 0x109   :  { %s443_s27 = scalar_lea.hbm %s616_s4, 2048 }
 0x10a   :  { %p444_p5 = scmp.ne.s32.totalorder %s616_s4, %s443_s27  ;;  %p447_p6 = scmp.lt.u32.totalorder %s443_s27, %s616_s4 }
 0x10c   :  { %p449_p7 = pnand %p447_p6, %p444_p5 }
 0x10e   :  { %452 = shalt.err (!%p449_p7)
}
 0x10f   :  { %s456_s6 = smov 128   ;;  %s457_s7 = smov 8  }
 0x110   :  { %326 = dma.vmem_to_hbm [thread:$0]  %s321_s0, 2048, %s616_s4, [#allocation3], %s456_s6, %s456_s6, %s457_s7  }
 0x111   :  { %453 = dma.done.wait [#allocation3], 2048  }
 0x112   :  { %454 = vsyncadd [#allocation3], 4294965248 }
 0x113   :  { %330 = vsyncpa [#allocation3], 1 }

// kernel: _lambda_.5
= control target key start
LH: loop header
LB: loop body
LE: loop exit
PB: predicated region body
PF: predicated region fallthrough
CT: control target
= control target key end

     0   :  { %s2926_s1 = inlined_call_operand.vmem [shape: bf16[1152,128], index: 1, kind: input, shape index: {}]   ;;  %s2927_s0 = inlined_call_operand.vmem [shape: bf16[128,1152], index: 0, kind: input, shape index: {}]   ;;  %s2928_s2 = inlined_call_operand.vmem [shape: f32[1,128], index: 2, kind: input, shape index: {}]   ;;  %s2929_s3 = inlined_call_operand.vmem [shape: bf16[128,128], index: 3, kind: output, shape index: {}]  }
   0x1   :  { %v2175_v0 = vld [vmem:[%s2926_s1 + $0x40] sm:$0xff]   ;;  %v2179_v4 = vld [vmem:[%s2926_s1 + $0x48] sm:$0xff]   ;;  %v2183_v8 = vld [vmem:[%s2926_s1 + $0x50] sm:$0xff]  }
   0x2   :  { %v2176_v1 = vld [vmem:[%s2926_s1 + $0xc0] sm:$0xff]   ;;  %1855 = vmatprep.subr.bf16.mxu0 %v2175_v0  ;;  %v2180_v5 = vld [vmem:[%s2926_s1 + $0xc8] sm:$0xff]   ;;  %v2184_v9 = vld [vmem:[%s2926_s1 + $0xd0] sm:$0xff]  }
   0x3   :  { %v2177_v2 = vld [vmem:[%s2926_s1] sm:$0xff]   ;;  %1919 = vmatprep.subr.bf16.mxu1 %v2176_v1  ;;  %v2181_v6 = vld [vmem:[%s2926_s1 + $0x8] sm:$0xff]   ;;  %v2185_v10 = vld [vmem:[%s2926_s1 + $0x10] sm:$0xff]  }
   0x4   :  { %v2178_v3 = vld [vmem:[%s2926_s1 + $0x80] sm:$0xff]   ;;  %1856 = vmatpush3.bf16.msra.mxu0 %v2177_v2  ;;  %v2182_v7 = vld [vmem:[%s2926_s1 + $0x88] sm:$0xff]   ;;  %v2186_v11 = vld [vmem:[%s2926_s1 + $0x90] sm:$0xff]  }
   0x5   :  { %1920 = vmatpush3.bf16.msra.mxu1 %v2178_v3  ;;  %1857 = vmatprep.subr.bf16.mxu0 %v2179_v4  ;;  %v2187_v12 = vld [vmem:[%s2926_s1 + $0x58] sm:$0xff]   ;;  %v2191_v16 = vld [vmem:[%s2926_s1 + $0x60] sm:$0xff]   ;;  %v2195_v20 = vld [vmem:[%s2926_s1 + $0x68] sm:$0xff]  }
   0x6   :  { %1921 = vmatprep.subr.bf16.mxu1 %v2180_v5  ;;  %v2188_v13 = vld [vmem:[%s2926_s1 + $0xd8] sm:$0xff]   ;;  %v2192_v17 = vld [vmem:[%s2926_s1 + $0xe0] sm:$0xff]   ;;  %v2196_v21 = vld [vmem:[%s2926_s1 + $0xe8] sm:$0xff]  }
   0x7   :  { %v2189_v14 = vld [vmem:[%s2926_s1 + $0x18] sm:$0xff]   ;;  %v2193_v18 = vld [vmem:[%s2926_s1 + $0x20] sm:$0xff]   ;;  %v2197_v22 = vld [vmem:[%s2926_s1 + $0x28] sm:$0xff]  }
   0x8   :  { %1858 = vmatpush3.bf16.msra.mxu0 %v2181_v6  ;;  %v2190_v15 = vld [vmem:[%s2926_s1 + $0x98] sm:$0xff]   ;;  %v2194_v19 = vld [vmem:[%s2926_s1 + $0xa0] sm:$0xff]   ;;  %v2198_v23 = vld [vmem:[%s2926_s1 + $0xa8] sm:$0xff]  }
   0x9   :  { %1922 = vmatpush3.bf16.msra.mxu1 %v2182_v7  ;;  %1859 = vmatprep.subr.bf16.mxu0 %v2183_v8  ;;  %v2199_v24 = vld [vmem:[%s2926_s1 + $0x70] sm:$0xff]   ;;  %v2203_v28 = vld [vmem:[%s2926_s1 + $0x78] sm:$0xff]   ;;  %v2207_v32 = vld [vmem:[%s2927_s0] ss:$36 sps:$4 sm:$0xff]  }
   0xa   :  { %1923 = vmatprep.subr.bf16.mxu1 %v2184_v9  ;;  %v2200_v25 = vld [vmem:[%s2926_s1 + $0xf0] sm:$0xff]   ;;  %v2204_v29 = vld [vmem:[%s2926_s1 + $0xf8] sm:$0xff]   ;;  %v2209_v33 = vld [vmem:[%s2927_s0 + $0x4] ss:$36 sps:$4 sm:$0xff]  }
   0xb   :  { %v2201_v26 = vld [vmem:[%s2926_s1 + $0x30] sm:$0xff]   ;;  %v2205_v30 = vld [vmem:[%s2926_s1 + $0x38] sm:$0xff]   ;;  %v2210_v34 = vld [vmem:[%s2927_s0 + $0x8] ss:$36 sps:$4 sm:$0xff]   ;;  %1078 = vmatprep.mubr.bf16.mxu0 %v2209_v33 }
   0xc   :  { %1860 = vmatpush3.bf16.msra.mxu0 %v2185_v10  ;;  %v2202_v27 = vld [vmem:[%s2926_s1 + $0xb0] sm:$0xff]   ;;  %v2206_v31 = vld [vmem:[%s2926_s1 + $0xb8] sm:$0xff]   ;;  %v2213_v36 = vld [vmem:[%s2926_s1 + $0x140] sm:$0xff]  }
   0xd   :  { %1924 = vmatpush3.bf16.msra.mxu1 %v2186_v11  ;;  %1861 = vmatprep.subr.bf16.mxu0 %v2187_v12  ;;  %v2212_v35 = vld [vmem:[%s2927_s0 + $0xc] ss:$36 sps:$4 sm:$0xff]   ;;  %v2214_v37 = vld [vmem:[%s2926_s1 + $0x1c0] sm:$0xff]   ;;  %v2219_v41 = vld [vmem:[%s2927_s0 + $0x54] ss:$36 sps:$4 sm:$0xff]  }
   0xe   :  { %1925 = vmatprep.subr.bf16.mxu1 %v2188_v13  ;;  %1175 = vmatprep.mubr.bf16.mxu1 %v2212_v35  ;;  %v2215_v38 = vld [vmem:[%s2926_s1 + $0x100] sm:$0xff]   ;;  %v2217_v40 = vld [vmem:[%s2927_s0 + $0x4c] ss:$36 sps:$4 sm:$0xff]   ;;  %v2227_v48 = vld [vmem:[%s2927_s0 + $0x94] ss:$36 sps:$4 sm:$0xff]  }
   0xf   :  { %v2216_v39 = vld [vmem:[%s2926_s1 + $0x180] sm:$0xff]   ;;  %v2221_v42 = vld [vmem:[%s2927_s0 + $0x48] ss:$36 sps:$4 sm:$0xff]   ;;  %v2222_v43 = vld [vmem:[%s2927_s0 + $0x50] ss:$36 sps:$4 sm:$0xff]  }
  0x10   :  { %1862 = vmatpush3.bf16.msra.mxu0 %v2189_v14  ;;  %v2223_v44 = vld [vmem:[%s2926_s1 + $0x148] sm:$0xff]   ;;  %v2229_v49 = vld [vmem:[%s2927_s0 + $0x9c] ss:$36 sps:$4 sm:$0xff]   ;;  %v2231_v50 = vld [vmem:[%s2927_s0 + $0x90] ss:$36 sps:$4 sm:$0xff]  }
  0x11   :  { %1926 = vmatpush3.bf16.msra.mxu1 %v2190_v15  ;;  %1863 = vmatprep.subr.bf16.mxu0 %v2191_v16  ;;  %v2224_v45 = vld [vmem:[%s2926_s1 + $0x1c8] sm:$0xff]   ;;  %v2232_v51 = vld [vmem:[%s2927_s0 + $0x98] ss:$36 sps:$4 sm:$0xff]   ;;  %v2233_v52 = vld [vmem:[%s2926_s1 + $0x150] sm:$0xff]  }
  0x12   :  { %1927 = vmatprep.subr.bf16.mxu1 %v2192_v17  ;;  %v2225_v46 = vld [vmem:[%s2926_s1 + $0x108] sm:$0xff]   ;;  %v2234_v53 = vld [vmem:[%s2926_s1 + $0x1d0] sm:$0xff]   ;;  %v2237_v56 = vld [vmem:[%s2927_s0 + $0xdc] ss:$36 sps:$4 sm:$0xff]  }
  0x13   :  { %v2226_v47 = vld [vmem:[%s2926_s1 + $0x188] sm:$0xff]   ;;  %v2235_v54 = vld [vmem:[%s2926_s1 + $0x110] sm:$0xff]   ;;  %v2241_v58 = vld [vmem:[%s2927_s0 + $0xd8] ss:$36 sps:$4 sm:$0xff]  }
  0x14   :  { %1864 = vmatpush3.bf16.msra.mxu0 %v2193_v18  ;;  %v2236_v55 = vld [vmem:[%s2926_s1 + $0x190] sm:$0xff]   ;;  %v2239_v57 = vld [vmem:[%s2927_s0 + $0xe4] ss:$36 sps:$4 sm:$0xff]   ;;  %v2243_v60 = vld [vmem:[%s2926_s1 + $0x158] sm:$0xff]  }
  0x15   :  { %1928 = vmatpush3.bf16.msra.mxu1 %v2194_v19  ;;  %1865 = vmatprep.subr.bf16.mxu0 %v2195_v20  ;;  %v2242_v59 = vld [vmem:[%s2927_s0 + $0xe0] ss:$36 sps:$4 sm:$0xff]   ;;  %v2244_v61 = vld [vmem:[%s2926_s1 + $0x1d8] sm:$0xff]   ;;  %v2249_v1 = vld [vmem:[%s2927_s0 + $0x12c] ss:$36 sps:$4 sm:$0xff]  }
  0x16   :  { %1929 = vmatprep.subr.bf16.mxu1 %v2196_v21  ;;  %v2245_v62 = vld [vmem:[%s2926_s1 + $0x118] sm:$0xff]   ;;  %v2247_v0 = vld [vmem:[%s2927_s0 + $0x124] ss:$36 sps:$4 sm:$0xff]   ;;  %v2257_v8 = vld [vmem:[%s2927_s0 + $0x16c] ss:$36 sps:$4 sm:$0xff]  }
  0x17   :  { %v2246_v63 = vld [vmem:[%s2926_s1 + $0x198] sm:$0xff]   ;;  %v2251_v2 = vld [vmem:[%s2927_s0 + $0x120] ss:$36 sps:$4 sm:$0xff]   ;;  %v2252_v4 = vld [vmem:[%s2927_s0 + $0x128] ss:$36 sps:$4 sm:$0xff]  }
  0x18   :  { %1866 = vmatpush3.bf16.msra.mxu0 %v2197_v22  ;;  %v2253_v3 = vld [vmem:[%s2926_s1 + $0x160] sm:$0xff]   ;;  %v2259_v9 = vld [vmem:[%s2927_s0 + $0x174] ss:$36 sps:$4 sm:$0xff]   ;;  %v2263_v10 = vld [vmem:[%s2926_s1 + $0x168] sm:$0xff]  }
  0x19   :  { %1930 = vmatpush3.bf16.msra.mxu1 %v2198_v23  ;;  %1867 = vmatprep.subr.bf16.mxu0 %v2199_v24  ;;  %v2254_v5 = vld [vmem:[%s2926_s1 + $0x1e0] sm:$0xff]   ;;  %v2264_v11 = vld [vmem:[%s2926_s1 + $0x1e8] sm:$0xff]   ;;  %v2262_v15 = vld [vmem:[%s2927_s0 + $0x170] ss:$36 sps:$4 sm:$0xff]  }
  0x1a   :  { %1931 = vmatprep.subr.bf16.mxu1 %v2200_v25  ;;  %v2255_v6 = vld [vmem:[%s2926_s1 + $0x120] sm:$0xff]   ;;  %v2261_v12 = vld [vmem:[%s2927_s0 + $0x168] ss:$36 sps:$4 sm:$0xff]   ;;  %v2267_v16 = vld [vmem:[%s2927_s0 + $0x1b4] ss:$36 sps:$4 sm:$0xff]  }
  0x1b   :  { %v2256_v7 = vld [vmem:[%s2926_s1 + $0x1a0] sm:$0xff]   ;;  %v2265_v13 = vld [vmem:[%s2926_s1 + $0x128] sm:$0xff]   ;;  %v2273_v18 = vld [vmem:[%s2926_s1 + $0x170] sm:$0xff]  }
  0x1c   :  { %1868 = vmatpush3.bf16.msra.mxu0 %v2201_v26  ;;  %v2266_v14 = vld [vmem:[%s2926_s1 + $0x1a8] sm:$0xff]   ;;  %v2269_v17 = vld [vmem:[%s2927_s0 + $0x1bc] ss:$36 sps:$4 sm:$0xff]   ;;  %v2274_v19 = vld [vmem:[%s2926_s1 + $0x1f0] sm:$0xff]  }
  0x1d   :  { %1932 = vmatpush3.bf16.msra.mxu1 %v2202_v27  ;;  %1869 = vmatprep.subr.bf16.mxu0 %v2203_v28  ;;  %v2275_v20 = vld [vmem:[%s2926_s1 + $0x130] sm:$0xff]   ;;  %v2272_v23 = vld [vmem:[%s2927_s0 + $0x1b8] ss:$36 sps:$4 sm:$0xff]   ;;  %v2279_v25 = vld [vmem:[%s2927_s0 + $0x204] ss:$36 sps:$4 sm:$0xff]  }
  0x1e   :  { %1933 = vmatprep.subr.bf16.mxu1 %v2204_v29  ;;  %v2276_v21 = vld [vmem:[%s2926_s1 + $0x1b0] sm:$0xff]   ;;  %v2277_v24 = vld [vmem:[%s2927_s0 + $0x1fc] ss:$36 sps:$4 sm:$0xff]  }
  0x1f   :  { %v2271_v22 = vld [vmem:[%s2927_s0 + $0x1b0] ss:$36 sps:$4 sm:$0xff]   ;;  %v2283_v26 = vld [vmem:[%s2926_s1 + $0x178] sm:$0xff]  }
  0x20   :  { %1870 = vmatpush3.bf16.msra.mxu0 %v2205_v30  ;;  %v2284_v27 = vld [vmem:[%s2926_s1 + $0x1f8] sm:$0xff]   ;;  %v2287_v35 = vld [vmem:[%s2927_s0 + $0x10] ss:$36 sps:$4 sm:$0xff]  }
  0x21   :  { %1934 = vmatpush3.bf16.msra.mxu1 %v2206_v31  ;;  %1983 = vmatprep.subr.bf16.mxu0 %v2213_v36  ;;  %v2285_v28 = vld [vmem:[%s2926_s1 + $0x138] sm:$0xff]   ;;  %v2282_v31 = vld [vmem:[%s2927_s0 + $0x200] ss:$36 sps:$4 sm:$0xff]  }
  0x22   :  { %2047 = vmatprep.subr.bf16.mxu1 %v2214_v37  ;;  %v2286_v29 = vld [vmem:[%s2926_s1 + $0x1b8] sm:$0xff]  }
  0x23   :  { %1079 = vmatmul.mubr.bf16.vlgmr.msra.gmra.mrb[0].mxu0 %v2207_v32  ;;  %v2281_v30 = vld [vmem:[%s2927_s0 + $0x1f8] ss:$36 sps:$4 sm:$0xff]   ;;  %v2293_v32 = vld [vmem:[%s2926_s1 + $0x200] sm:$0xff]  }
  0x24   :  { %1176 = vmatmul.mubr.bf16.vlgmr.msra.gmra.mrb[0].mxu1 %v2210_v34  ;;  %1984 = vmatpush3.bf16.msra.mxu0 %v2215_v38  ;;  %v2289_v33 = vld [vmem:[%s2927_s0 + $0x14] ss:$36 sps:$4 sm:$0xff]   ;;  %v2292_v34 = vld [vmem:[%s2927_s0 + $0x1c] ss:$36 sps:$4 sm:$0xff]   ;;  %v2296_v38 = vld [vmem:[%s2927_s0 + $0x64] ss:$36 sps:$4 sm:$0xff]  }
  0x25   :  { %2048 = vmatpush3.bf16.msra.mxu1 %v2216_v39  ;;  %1086 = vmatprep.mubr.bf16.mxu0 %v2217_v40  ;;  %v2290_v36 = vld [vmem:[%s2927_s0 + $0x18] ss:$36 sps:$4 sm:$0xff]   ;;  %v2300_v39 = vld [vmem:[%s2926_s1 + $0x208] sm:$0xff]   ;;  %v2307_v40 = vld [vmem:[%s2926_s1 + $0x210] sm:$0xff]  }
  0x26   :  { %1183 = vmatprep.mubr.bf16.mxu1 %v2219_v41  ;;  %1985 = vmatprep.subr.bf16.mxu0 %v2223_v44  ;;  %v2294_v37 = vld [vmem:[%s2927_s0 + $0x5c] ss:$36 sps:$4 sm:$0xff]   ;;  %v2303_v44 = vld [vmem:[%s2927_s0 + $0xac] ss:$36 sps:$4 sm:$0xff]  }
  0x27   :  { %2049 = vmatprep.subr.bf16.mxu1 %v2224_v45  ;;  %v2298_v41 = vld [vmem:[%s2927_s0 + $0x58] ss:$36 sps:$4 sm:$0xff]  }
  0x28   :  { %1986 = vmatpush3.bf16.msra.mxu0 %v2225_v46  ;;  %v2314_v45 = vld [vmem:[%s2926_s1 + $0x218] sm:$0xff]   ;;  %v2321_v46 = vld [vmem:[%s2926_s1 + $0x220] sm:$0xff]  }
  0x29   :  { %2050 = vmatpush3.bf16.msra.mxu1 %v2226_v47  ;;  %1987 = vmatprep.subr.bf16.mxu0 %v2233_v52  ;;  %v2305_v47 = vld [vmem:[%s2927_s0 + $0xa0] ss:$36 sps:$4 sm:$0xff]   ;;  %v2312_v52 = vld [vmem:[%s2927_s0 + $0xe8] ss:$36 sps:$4 sm:$0xff]  }
  0x2a   :  { %2051 = vmatprep.subr.bf16.mxu1 %v2234_v53  ;;  %v2335_v53 = vld [vmem:[%s2926_s1 + $0x230] sm:$0xff]  }
  0x2b   :  { %1087 = vmatmul.mubr.bf16.gmra.mrb[4].mxu0 %v2221_v42  ;;  %v2299_v42 = vld [vmem:[%s2927_s0 + $0x60] ss:$36 sps:$4 sm:$0xff]  }
  0x2c   :  { %1184 = vmatmul.mubr.bf16.gmra.mrb[4].mxu1 %v2222_v43  ;;  %1094 = vmatprep.mubr.bf16.mxu0 %v2227_v48  ;;  %v2301_v43 = vld [vmem:[%s2927_s0 + $0xa4] ss:$36 sps:$4 sm:$0xff]  }
  0x2d   :  { %1191 = vmatprep.mubr.bf16.mxu1 %v2229_v49  ;;  %1988 = vmatpush3.bf16.msra.mxu0 %v2235_v54  ;;  %v2306_v48 = vld [vmem:[%s2927_s0 + $0xa8] ss:$36 sps:$4 sm:$0xff]   ;;  %v2313_v54 = vld [vmem:[%s2927_s0 + $0xf0] ss:$36 sps:$4 sm:$0xff]  }
  0x2e   :  { %2052 = vmatpush3.bf16.msra.mxu1 %v2236_v55  ;;  %1989 = vmatprep.subr.bf16.mxu0 %v2243_v60  ;;  %v2308_v49 = vld [vmem:[%s2927_s0 + $0xec] ss:$36 sps:$4 sm:$0xff]   ;;  %v2315_v55 = vld [vmem:[%s2927_s0 + $0x134] ss:$36 sps:$4 sm:$0xff]   ;;  %v2322_v60 = vld [vmem:[%s2927_s0 + $0x17c] ss:$36 sps:$4 sm:$0xff]  }
  0x2f   :  { %2053 = vmatprep.subr.bf16.mxu1 %v2244_v61  ;;  %v2324_v61 = vld [vmem:[%s2927_s0 + $0x184] ss:$36 sps:$4 sm:$0xff]  }
  0x31   :  { %1990 = vmatpush3.bf16.msra.mxu0 %v2245_v62  ;;  %v2326_v62 = vld [vmem:[%s2927_s0 + $0x178] ss:$36 sps:$4 sm:$0xff]  }
  0x32   :  { %2054 = vmatpush3.bf16.msra.mxu1 %v2246_v63  ;;  %1991 = vmatprep.subr.bf16.mxu0 %v2253_v3  ;;  %v2327_v63 = vld [vmem:[%s2927_s0 + $0x180] ss:$36 sps:$4 sm:$0xff]   ;;  %v2334_v3 = vld [vmem:[%s2927_s0 + $0x1c8] ss:$36 sps:$4 sm:$0xff]  }
  0x33   :  { %1095 = vmatmul.mubr.bf16.gmra.mrb[8].mxu0 %v2231_v50  ;;  %2055 = vmatprep.subr.bf16.mxu1 %v2254_v5  ;;  %v2310_v50 = vld [vmem:[%s2927_s0 + $0xf4] ss:$36 sps:$4 sm:$0xff]  }
  0x34   :  { %1192 = vmatmul.mubr.bf16.gmra.mrb[8].mxu1 %v2232_v51  ;;  %1102 = vmatprep.mubr.bf16.mxu0 %v2237_v56  ;;  %v2328_v51 = vld [vmem:[%s2926_s1 + $0x228] sm:$0xff]   ;;  %v2317_v56 = vld [vmem:[%s2927_s0 + $0x13c] ss:$36 sps:$4 sm:$0xff]   ;;  %v2338_v5 = vld [vmem:[%s2927_s0 + $0x214] ss:$36 sps:$4 sm:$0xff]  }
  0x35   :  { %1199 = vmatprep.mubr.bf16.mxu1 %v2239_v57  ;;  %1992 = vmatpush3.bf16.msra.mxu0 %v2255_v6  ;;  %v2342_v57 = vld [vmem:[%s2926_s1 + $0x238] sm:$0xff]   ;;  %v2340_v6 = vld [vmem:[%s2927_s0 + $0x208] ss:$36 sps:$4 sm:$0xff]  }
  0x36   :  { %2056 = vmatpush3.bf16.msra.mxu1 %v2256_v7  ;;  %1993 = vmatprep.subr.bf16.mxu0 %v2263_v10  ;;  %v2341_v7 = vld [vmem:[%s2927_s0 + $0x210] ss:$36 sps:$4 sm:$0xff]   ;;  %v2345_v10 = vld [vmem:[%s2927_s0 + $0x68] ss:$36 sps:$4 sm:$0xff]  }
  0x37   :  { %2057 = vmatprep.subr.bf16.mxu1 %v2264_v11  ;;  %v2346_v11 = vld [vmem:[%s2927_s0 + $0x188] ss:$36 sps:$4 sm:$0xff]  }
  0x39   :  { %1994 = vmatpush3.bf16.msra.mxu0 %v2265_v13  ;;  %v2348_v13 = vld [vmem:[%s2927_s0 + $0x1d0] ss:$36 sps:$4 sm:$0xff]  }
  0x3a   :  { %2058 = vmatpush3.bf16.msra.mxu1 %v2266_v14  ;;  %1995 = vmatprep.subr.bf16.mxu0 %v2273_v18  ;;  %v2349_v14 = vld [vmem:[%s2927_s0 + $0xf8] ss:$36 sps:$4 sm:$0xff]   ;;  %v2806_v18 = vld [vmem:[%s2928_s2] ss:$0 sm:$0xff] }
  0x3b   :  { %1103 = vmatmul.mubr.bf16.gmra.mrb[12].mxu0 %v2241_v58  ;;  %2059 = vmatprep.subr.bf16.mxu1 %v2274_v19  ;;  %v2319_v58 = vld [vmem:[%s2927_s0 + $0x130] ss:$36 sps:$4 sm:$0xff]  }
  0x3c   :  { %1200 = vmatmul.mubr.bf16.gmra.mrb[12].mxu1 %v2242_v59  ;;  %1110 = vmatprep.mubr.bf16.mxu0 %v2247_v0  ;;  %v2320_v59 = vld [vmem:[%s2927_s0 + $0x138] ss:$36 sps:$4 sm:$0xff]   ;;  %v2329_v0 = vld [vmem:[%s2927_s0 + $0x1c4] ss:$36 sps:$4 sm:$0xff]  }
  0x3d   :  { %1207 = vmatprep.mubr.bf16.mxu1 %v2249_v1  ;;  %1996 = vmatpush3.bf16.msra.mxu0 %v2275_v20  ;;  %v2331_v1 = vld [vmem:[%s2927_s0 + $0x1cc] ss:$36 sps:$4 sm:$0xff]  }
  0x3e   :  { %2060 = vmatpush3.bf16.msra.mxu1 %v2276_v21  ;;  %1997 = vmatprep.subr.bf16.mxu0 %v2283_v26 }
  0x3f   :  { %2061 = vmatprep.subr.bf16.mxu1 %v2284_v27 }
  0x41   :  { %1998 = vmatpush3.bf16.msra.mxu0 %v2285_v28 }
  0x42   :  { %2062 = vmatpush3.bf16.msra.mxu1 %v2286_v29  ;;  %2127 = vmatprep.subr.bf16.mxu0 %v2293_v32 }
  0x43   :  { %1111 = vmatmul.mubr.bf16.gmra.mrb[16].mxu0 %v2251_v2  ;;  %2159 = vmatprep.subr.bf16.mxu1 %v2293_v32  ;;  %v2333_v2 = vld [vmem:[%s2927_s0 + $0x1c0] ss:$36 sps:$4 sm:$0xff]  }
  0x44   :  { %1208 = vmatmul.mubr.bf16.gmra.mrb[16].mxu1 %v2252_v4  ;;  %1118 = vmatprep.mubr.bf16.mxu0 %v2257_v8  ;;  %v2336_v4 = vld [vmem:[%s2927_s0 + $0x20c] ss:$36 sps:$4 sm:$0xff]   ;;  %v2343_v8 = vld [vmem:[%s2927_s0 + $0x20] ss:$36 sps:$4 sm:$0xff]  }
  0x45   :  { %1215 = vmatprep.mubr.bf16.mxu1 %v2259_v9  ;;  %v2344_v9 = vld [vmem:[%s2927_s0 + $0x140] ss:$36 sps:$4 sm:$0xff]  }
  0x4b   :  { %1119 = vmatmul.mubr.bf16.gmra.mrb[20].mxu0 %v2261_v12  ;;  %v2347_v12 = vld [vmem:[%s2927_s0 + $0xb0] ss:$36 sps:$4 sm:$0xff]  }
  0x4c   :  { %1216 = vmatmul.mubr.bf16.gmra.mrb[20].mxu1 %v2262_v15  ;;  %1126 = vmatprep.mubr.bf16.mxu0 %v2267_v16  ;;  %v2350_v15 = vld [vmem:[%s2927_s0 + $0x218] ss:$36 sps:$4 sm:$0xff]  }
  0x4d   :  { %1223 = vmatprep.mubr.bf16.mxu1 %v2269_v17 }
  0x53   :  { %1127 = vmatmul.mubr.bf16.gmra.mrb[24].mxu0 %v2271_v22 }
  0x54   :  { %1224 = vmatmul.mubr.bf16.gmra.mrb[24].mxu1 %v2272_v23  ;;  %1134 = vmatprep.mubr.bf16.mxu0 %v2277_v24 }
  0x55   :  { %1231 = vmatprep.mubr.bf16.mxu1 %v2279_v25 }
  0x5b   :  { %1135 = vmatmul.mubr.bf16.gmra.mrb[28].mxu0 %v2281_v30 }
  0x5c   :  { %1232 = vmatmul.mubr.bf16.gmra.mrb[28].mxu1 %v2282_v31  ;;  %1272 = vmatprep.mubr.bf16.mxu0 %v2289_v33 }
  0x5d   :  { %1369 = vmatprep.mubr.bf16.mxu1 %v2292_v34 }
  0x63   :  { %1273 = vmatmul.mubr.bf16.vlgmr.msra.gmra.mrb[32].mxu0 %v2287_v35 }
  0x64   :  { %1370 = vmatmul.mubr.bf16.vlgmr.msra.gmra.mrb[32].mxu1 %v2290_v36  ;;  %2128 = vmatpush3.bf16.msra.mxu0 %v2293_v32 }
  0x65   :  { %2167 = vmatpush3.bf16.msra.mxu1 %v2293_v32  ;;  %1280 = vmatprep.mubr.bf16.mxu0 %v2294_v37 }
  0x66   :  { %1377 = vmatprep.mubr.bf16.mxu1 %v2296_v38  ;;  %2129 = vmatprep.subr.bf16.mxu0 %v2300_v39 }
  0x67   :  { %2160 = vmatprep.subr.bf16.mxu1 %v2300_v39 }
  0x68   :  { %2130 = vmatpush3.bf16.msra.mxu0 %v2300_v39 }
  0x69   :  { %2168 = vmatpush3.bf16.msra.mxu1 %v2300_v39  ;;  %2131 = vmatprep.subr.bf16.mxu0 %v2307_v40 }
  0x6a   :  { %2161 = vmatprep.subr.bf16.mxu1 %v2307_v40 }
  0x6b   :  { %1281 = vmatmul.mubr.bf16.gmra.mrb[36].mxu0 %v2298_v41 }
  0x6c   :  { %1378 = vmatmul.mubr.bf16.gmra.mrb[36].mxu1 %v2299_v42  ;;  %1288 = vmatprep.mubr.bf16.mxu0 %v2301_v43 }
  0x6d   :  { %1385 = vmatprep.mubr.bf16.mxu1 %v2303_v44  ;;  %2132 = vmatpush3.bf16.msra.mxu0 %v2307_v40 }
  0x6e   :  { %2169 = vmatpush3.bf16.msra.mxu1 %v2307_v40  ;;  %2133 = vmatprep.subr.bf16.mxu0 %v2314_v45 }
  0x6f   :  { %2162 = vmatprep.subr.bf16.mxu1 %v2314_v45 }
  0x71   :  { %2134 = vmatpush3.bf16.msra.mxu0 %v2314_v45 }
  0x72   :  { %2170 = vmatpush3.bf16.msra.mxu1 %v2314_v45  ;;  %2135 = vmatprep.subr.bf16.mxu0 %v2321_v46 }
  0x73   :  { %1289 = vmatmul.mubr.bf16.gmra.mrb[40].mxu0 %v2305_v47  ;;  %2163 = vmatprep.subr.bf16.mxu1 %v2321_v46 }
  0x74   :  { %1386 = vmatmul.mubr.bf16.gmra.mrb[40].mxu1 %v2306_v48  ;;  %1296 = vmatprep.mubr.bf16.mxu0 %v2308_v49 }
  0x75   :  { %1393 = vmatprep.mubr.bf16.mxu1 %v2310_v50  ;;  %2136 = vmatpush3.bf16.msra.mxu0 %v2321_v46 }
  0x76   :  { %2171 = vmatpush3.bf16.msra.mxu1 %v2321_v46  ;;  %2137 = vmatprep.subr.bf16.mxu0 %v2328_v51 }
  0x77   :  { %2164 = vmatprep.subr.bf16.mxu1 %v2328_v51 }
  0x79   :  { %2138 = vmatpush3.bf16.msra.mxu0 %v2328_v51 }
  0x7a   :  { %2172 = vmatpush3.bf16.msra.mxu1 %v2328_v51  ;;  %2139 = vmatprep.subr.bf16.mxu0 %v2335_v53 }
  0x7b   :  { %1297 = vmatmul.mubr.bf16.gmra.mrb[44].mxu0 %v2312_v52  ;;  %2165 = vmatprep.subr.bf16.mxu1 %v2335_v53 }
  0x7c   :  { %1394 = vmatmul.mubr.bf16.gmra.mrb[44].mxu1 %v2313_v54  ;;  %1304 = vmatprep.mubr.bf16.mxu0 %v2315_v55 }
  0x7d   :  { %1401 = vmatprep.mubr.bf16.mxu1 %v2317_v56  ;;  %2140 = vmatpush3.bf16.msra.mxu0 %v2335_v53 }
  0x7e   :  { %2173 = vmatpush3.bf16.msra.mxu1 %v2335_v53  ;;  %2141 = vmatprep.subr.bf16.mxu0 %v2342_v57 }
  0x7f   :  { %2166 = vmatprep.subr.bf16.mxu1 %v2342_v57 }
  0x81   :  { %2142 = vmatpush3.bf16.msra.mxu0 %v2342_v57 }
  0x82   :  { %2174 = vmatpush3.bf16.msra.mxu1 %v2342_v57 }
  0x83   :  { %1305 = vmatmul.mubr.bf16.gmra.mrb[48].mxu0 %v2319_v58 }
  0x84   :  { %1402 = vmatmul.mubr.bf16.gmra.mrb[48].mxu1 %v2320_v59  ;;  %1312 = vmatprep.mubr.bf16.mxu0 %v2322_v60 }
  0x85   :  { %1409 = vmatprep.mubr.bf16.mxu1 %v2324_v61 }
  0x8b   :  { %1313 = vmatmul.mubr.bf16.gmra.mrb[52].mxu0 %v2326_v62 }
  0x8c   :  { %1410 = vmatmul.mubr.bf16.gmra.mrb[52].mxu1 %v2327_v63  ;;  %1320 = vmatprep.mubr.bf16.mxu0 %v2329_v0 }
  0x8d   :  { %1417 = vmatprep.mubr.bf16.mxu1 %v2331_v1 }
  0x93   :  { %1321 = vmatmul.mubr.bf16.gmra.mrb[56].mxu0 %v2333_v2 }
  0x94   :  { %1418 = vmatmul.mubr.bf16.gmra.mrb[56].mxu1 %v2334_v3  ;;  %1328 = vmatprep.mubr.bf16.mxu0 %v2336_v4 }
  0x95   :  { %1425 = vmatprep.mubr.bf16.mxu1 %v2338_v5 }
  0x9b   :  { %1329 = vmatmul.mubr.bf16.gmra.mrb[60].mxu0 %v2340_v6 }
  0x9c   :  { %1426 = vmatmul.mubr.bf16.gmra.mrb[60].mxu1 %v2341_v7  ;;  %2143 = vmatprep.mubr.bf16.mxu0 %v2343_v8 }
  0x9d   :  { %2151 = vmatprep.mubr.bf16.mxu1 %v2344_v9 }
  0xa3   :  { %2144 = vmatmul.mubr.bf16.vlgmr.msra.gmra.mrb[64].mxu0 %v2345_v10 }
  0xa4   :  { %2152 = vmatmul.mubr.bf16.vlgmr.msra.gmra.mrb[64].mxu1 %v2346_v11  ;;  %2147 = vmatprep.mubr.bf16.mxu0 %v2347_v12 }
  0xa5   :  { %2155 = vmatprep.mubr.bf16.mxu1 %v2348_v13 }
  0xab   :  { %2148 = vmatmul.mubr.bf16.gmra.mrb[68].mxu0 %v2349_v14 }
  0xac   :  { %2156 = vmatmul.mubr.bf16.gmra.mrb[68].mxu1 %v2350_v15 }
  0xf6   :  { %v1871_v16 = vpop.f32.mrb[0].mxu0 }
  0xf7   :  { %v1935_v17 = vpop.f32.mrb[0].mxu1  ;;  %v1872_v19 = vpop.f32.mrb[1].mxu0 }
  0xf8   :  { %v1873_v20 = vadd.f32 %v1872_v19, %v1871_v16  ;;  %v1936_v21 = vpop.f32.mrb[1].mxu1  ;;  %v1874_v22 = vpop.f32.mrb[2].mxu0 }
  0xf9   :  { %v1937_v23 = vadd.f32 %v1936_v21, %v1935_v17  ;;  %v1938_v24 = vpop.f32.mrb[2].mxu1  ;;  %v1875_v25 = vpop.f32.mrb[3].mxu0 }
  0xfa   :  { %v1081_v26 = vadd.f32 %v1873_v20, %v2806_v18  ;;  %v1876_v27 = vadd.f32 %v1875_v25, %v1874_v22  ;;  %v1939_v28 = vpop.f32.mrb[3].mxu1 }
  0xfb   :  { %v1940_v29 = vadd.f32 %v1939_v28, %v1938_v24 }
  0xfc   :  { %v2809_v30 = vadd.f32 %v1937_v23, %v1081_v26  ;;  %v1084_v31 = vadd.f32 %v1876_v27, %v2806_v18 }
  0xfe   :  { %v2812_v32 = vadd.f32 %v1940_v29, %v1084_v31  ;;  %v1877_v33 = vpop.f32.mrb[4].mxu0 }
  0xff   :  { %v1941_v34 = vpop.f32.mrb[4].mxu1  ;;  %v1878_v35 = vpop.f32.mrb[5].mxu0 }
 0x100   :  { %v1879_v36 = vadd.f32 %v1878_v35, %v1877_v33  ;;  %v1942_v37 = vpop.f32.mrb[5].mxu1  ;;  %v1880_v38 = vpop.f32.mrb[6].mxu0 }
 0x101   :  { %v1943_v39 = vadd.f32 %v1942_v37, %v1941_v34  ;;  %v1944_v40 = vpop.f32.mrb[6].mxu1  ;;  %v1881_v41 = vpop.f32.mrb[7].mxu0 }
 0x102   :  { %v1089_v42 = vadd.f32 %v1879_v36, %v2806_v18  ;;  %v1882_v43 = vadd.f32 %v1881_v41, %v1880_v38  ;;  %v1945_v44 = vpop.f32.mrb[7].mxu1 }
 0x103   :  { %v1946_v45 = vadd.f32 %v1945_v44, %v1944_v40 }
 0x104   :  { %v2815_v46 = vadd.f32 %v1943_v39, %v1089_v42  ;;  %v1092_v47 = vadd.f32 %v1882_v43, %v2806_v18 }
 0x106   :  { %v2818_v48 = vadd.f32 %v1946_v45, %v1092_v47  ;;  %v1883_v49 = vpop.f32.mrb[8].mxu0 }
 0x107   :  { %v1947_v50 = vpop.f32.mrb[8].mxu1  ;;  %v1884_v51 = vpop.f32.mrb[9].mxu0 }
 0x108   :  { %v1885_v52 = vadd.f32 %v1884_v51, %v1883_v49  ;;  %v1948_v53 = vpop.f32.mrb[9].mxu1  ;;  %v1886_v54 = vpop.f32.mrb[10].mxu0 }
 0x109   :  { %v1949_v55 = vadd.f32 %v1948_v53, %v1947_v50  ;;  %v1950_v56 = vpop.f32.mrb[10].mxu1  ;;  %v1887_v57 = vpop.f32.mrb[11].mxu0 }
 0x10a   :  { %v1097_v58 = vadd.f32 %v1885_v52, %v2806_v18  ;;  %v1888_v59 = vadd.f32 %v1887_v57, %v1886_v54  ;;  %v1951_v60 = vpop.f32.mrb[11].mxu1 }
 0x10b   :  { %v1952_v61 = vadd.f32 %v1951_v60, %v1950_v56 }
 0x10c   :  { %v2821_v62 = vadd.f32 %v1949_v55, %v1097_v58  ;;  %v1100_v63 = vadd.f32 %v1888_v59, %v2806_v18 }
 0x10e   :  { %v2824_v0 = vadd.f32 %v1952_v61, %v1100_v63  ;;  %v1889_v1 = vpop.f32.mrb[12].mxu0 }
 0x10f   :  { %v1953_v2 = vpop.f32.mrb[12].mxu1  ;;  %v1890_v3 = vpop.f32.mrb[13].mxu0 }
 0x110   :  { %v1891_v4 = vadd.f32 %v1890_v3, %v1889_v1  ;;  %v1954_v5 = vpop.f32.mrb[13].mxu1  ;;  %v1892_v6 = vpop.f32.mrb[14].mxu0 }
 0x111   :  { %v1955_v7 = vadd.f32 %v1954_v5, %v1953_v2  ;;  %v1956_v8 = vpop.f32.mrb[14].mxu1  ;;  %v1893_v9 = vpop.f32.mrb[15].mxu0 }
 0x112   :  { %v1105_v10 = vadd.f32 %v1891_v4, %v2806_v18  ;;  %v1894_v11 = vadd.f32 %v1893_v9, %v1892_v6  ;;  %v1957_v12 = vpop.f32.mrb[15].mxu1 }
 0x113   :  { %v1958_v13 = vadd.f32 %v1957_v12, %v1956_v8 }
 0x114   :  { %v2827_v14 = vadd.f32 %v1955_v7, %v1105_v10  ;;  %v1108_v15 = vadd.f32 %v1894_v11, %v2806_v18 }
 0x116   :  { %v2830_v16 = vadd.f32 %v1958_v13, %v1108_v15  ;;  %v1895_v17 = vpop.f32.mrb[16].mxu0 }
 0x117   :  { %v1959_v19 = vpop.f32.mrb[16].mxu1  ;;  %v1896_v20 = vpop.f32.mrb[17].mxu0 }
 0x118   :  { %v1897_v21 = vadd.f32 %v1896_v20, %v1895_v17  ;;  %v1960_v22 = vpop.f32.mrb[17].mxu1  ;;  %v1898_v23 = vpop.f32.mrb[18].mxu0 }
 0x119   :  { %v1961_v24 = vadd.f32 %v1960_v22, %v1959_v19  ;;  %v1962_v25 = vpop.f32.mrb[18].mxu1  ;;  %v1899_v26 = vpop.f32.mrb[19].mxu0 }
 0x11a   :  { %v1113_v27 = vadd.f32 %v1897_v21, %v2806_v18  ;;  %v1900_v28 = vadd.f32 %v1899_v26, %v1898_v23  ;;  %v1963_v29 = vpop.f32.mrb[19].mxu1 }
 0x11b   :  { %v1964_v31 = vadd.f32 %v1963_v29, %v1962_v25 }
 0x11c   :  { %v2833_v33 = vadd.f32 %v1961_v24, %v1113_v27  ;;  %v1116_v34 = vadd.f32 %v1900_v28, %v2806_v18 }
 0x11e   :  { %v2836_v35 = vadd.f32 %v1964_v31, %v1116_v34  ;;  %v1901_v36 = vpop.f32.mrb[20].mxu0 }
 0x11f   :  { %v1965_v37 = vpop.f32.mrb[20].mxu1  ;;  %v1902_v38 = vpop.f32.mrb[21].mxu0 }
 0x120   :  { %v1903_v39 = vadd.f32 %v1902_v38, %v1901_v36  ;;  %v1966_v40 = vpop.f32.mrb[21].mxu1  ;;  %v1904_v41 = vpop.f32.mrb[22].mxu0 }
 0x121   :  { %v1967_v42 = vadd.f32 %v1966_v40, %v1965_v37  ;;  %v1968_v43 = vpop.f32.mrb[22].mxu1  ;;  %v1905_v44 = vpop.f32.mrb[23].mxu0 }
 0x122   :  { %v1121_v45 = vadd.f32 %v1903_v39, %v2806_v18  ;;  %v1906_v47 = vadd.f32 %v1905_v44, %v1904_v41  ;;  %v1969_v49 = vpop.f32.mrb[23].mxu1 }
 0x123   :  { %v1970_v50 = vadd.f32 %v1969_v49, %v1968_v43 }
 0x124   :  { %v2839_v51 = vadd.f32 %v1967_v42, %v1121_v45  ;;  %v1124_v52 = vadd.f32 %v1906_v47, %v2806_v18 }
 0x126   :  { %v2842_v53 = vadd.f32 %v1970_v50, %v1124_v52  ;;  %v1907_v54 = vpop.f32.mrb[24].mxu0 }
 0x127   :  { %v1971_v55 = vpop.f32.mrb[24].mxu1  ;;  %v1908_v56 = vpop.f32.mrb[25].mxu0 }
 0x128   :  { %v1909_v57 = vadd.f32 %v1908_v56, %v1907_v54  ;;  %v1972_v58 = vpop.f32.mrb[25].mxu1  ;;  %v1910_v59 = vpop.f32.mrb[26].mxu0 }
 0x129   :  { %v1973_v60 = vadd.f32 %v1972_v58, %v1971_v55  ;;  %v1974_v61 = vpop.f32.mrb[26].mxu1  ;;  %v1911_v63 = vpop.f32.mrb[27].mxu0 }
 0x12a   :  { %v1129_v1 = vadd.f32 %v1909_v57, %v2806_v18  ;;  %v1912_v2 = vadd.f32 %v1911_v63, %v1910_v59  ;;  %v1975_v3 = vpop.f32.mrb[27].mxu1 }
 0x12b   :  { %v1976_v4 = vadd.f32 %v1975_v3, %v1974_v61 }
 0x12c   :  { %v2845_v5 = vadd.f32 %v1973_v60, %v1129_v1  ;;  %v1132_v6 = vadd.f32 %v1912_v2, %v2806_v18 }
 0x12e   :  { %v2848_v7 = vadd.f32 %v1976_v4, %v1132_v6  ;;  %v1913_v8 = vpop.f32.mrb[28].mxu0 }
 0x12f   :  { %v1977_v9 = vpop.f32.mrb[28].mxu1  ;;  %v1914_v10 = vpop.f32.mrb[29].mxu0 }
 0x130   :  { %v1915_v11 = vadd.f32 %v1914_v10, %v1913_v8  ;;  %v1978_v12 = vpop.f32.mrb[29].mxu1  ;;  %v1916_v13 = vpop.f32.mrb[30].mxu0 }
 0x131   :  { %v1979_v15 = vadd.f32 %v1978_v12, %v1977_v9  ;;  %v1980_v17 = vpop.f32.mrb[30].mxu1  ;;  %v1917_v19 = vpop.f32.mrb[31].mxu0 }
 0x132   :  { %v1137_v20 = vadd.f32 %v1915_v11, %v2806_v18  ;;  %v1918_v21 = vadd.f32 %v1917_v19, %v1916_v13  ;;  %v1981_v22 = vpop.f32.mrb[31].mxu1 }
 0x133   :  { %v1982_v23 = vadd.f32 %v1981_v22, %v1980_v17 }
 0x134   :  { %v2851_v24 = vadd.f32 %v1979_v15, %v1137_v20  ;;  %v1140_v25 = vadd.f32 %v1918_v21, %v2806_v18 }
 0x136   :  { %v2854_v26 = vadd.f32 %v1982_v23, %v1140_v25  ;;  %v1999_v27 = vpop.f32.mrb[32].mxu0 }
 0x137   :  { %v2063_v28 = vpop.f32.mrb[32].mxu1  ;;  %v2000_v29 = vpop.f32.mrb[33].mxu0 }
 0x138   :  { %v2001_v31 = vadd.f32 %v2000_v29, %v1999_v27  ;;  %v2064_v34 = vpop.f32.mrb[33].mxu1  ;;  %v2002_v36 = vpop.f32.mrb[34].mxu0 }
 0x139   :  { %v2065_v37 = vadd.f32 %v2064_v34, %v2063_v28  ;;  %v2066_v38 = vpop.f32.mrb[34].mxu1  ;;  %v2003_v39 = vpop.f32.mrb[35].mxu0 }
 0x13a   :  { %v1275_v40 = vadd.f32 %v2001_v31, %v2809_v30  ;;  %v2004_v41 = vadd.f32 %v2003_v39, %v2002_v36  ;;  %v2067_v42 = vpop.f32.mrb[35].mxu1 }
 0x13b   :  { %v2068_v43 = vadd.f32 %v2067_v42, %v2066_v38 }
 0x13c   :  { %v1278_v44 = vadd.f32 %v2004_v41, %v2812_v32  ;;  %v2858_v45 = vadd.f32 %v2065_v37, %v1275_v40 }
 0x13e   :  { %v2005_v18 = vpop.f32.mrb[36].mxu0  ;;  %v2860_v47 = vadd.f32 %v2068_v43, %v1278_v44 }
 0x13f   :  { %v2069_v49 = vpop.f32.mrb[36].mxu1  ;;  %v2006_v50 = vpop.f32.mrb[37].mxu0 }
 0x140   :  { %v2007_v52 = vadd.f32 %v2006_v50, %v2005_v18  ;;  %v2070_v54 = vpop.f32.mrb[37].mxu1  ;;  %v2008_v55 = vpop.f32.mrb[38].mxu0 }
 0x141   :  { %v2071_v56 = vadd.f32 %v2070_v54, %v2069_v49  ;;  %v2072_v57 = vpop.f32.mrb[38].mxu1  ;;  %v2009_v58 = vpop.f32.mrb[39].mxu0 }
 0x142   :  { %v1283_v30 = vadd.f32 %v2007_v52, %v2815_v46  ;;  %v2010_v59 = vadd.f32 %v2009_v58, %v2008_v55  ;;  %v2073_v60 = vpop.f32.mrb[39].mxu1 }
 0x143   :  { %v2074_v61 = vadd.f32 %v2073_v60, %v2072_v57 }
 0x144   :  { %v1286_v32 = vadd.f32 %v2010_v59, %v2818_v48  ;;  %v2864_v63 = vadd.f32 %v2071_v56, %v1283_v30 }
 0x146   :  { %v2011_v1 = vpop.f32.mrb[40].mxu0  ;;  %v2866_v2 = vadd.f32 %v2074_v61, %v1286_v32 }
 0x147   :  { %v2075_v3 = vpop.f32.mrb[40].mxu1  ;;  %v2012_v4 = vpop.f32.mrb[41].mxu0 }
 0x148   :  { %v2013_v6 = vadd.f32 %v2012_v4, %v2011_v1  ;;  %v2076_v8 = vpop.f32.mrb[41].mxu1  ;;  %v2014_v9 = vpop.f32.mrb[42].mxu0 }
 0x149   :  { %v2077_v10 = vadd.f32 %v2076_v8, %v2075_v3  ;;  %v2078_v11 = vpop.f32.mrb[42].mxu1  ;;  %v2015_v12 = vpop.f32.mrb[43].mxu0 }
 0x14a   :  { %v1291_v46 = vadd.f32 %v2013_v6, %v2821_v62  ;;  %v2016_v13 = vadd.f32 %v2015_v12, %v2014_v9  ;;  %v2079_v15 = vpop.f32.mrb[43].mxu1 }
 0x14b   :  { %v2080_v17 = vadd.f32 %v2079_v15, %v2078_v11 }
 0x14c   :  { %v1294_v48 = vadd.f32 %v2016_v13, %v2824_v0  ;;  %v2870_v19 = vadd.f32 %v2077_v10, %v1291_v46 }
 0x14e   :  { %v2017_v20 = vpop.f32.mrb[44].mxu0  ;;  %v2872_v21 = vadd.f32 %v2080_v17, %v1294_v48 }
 0x14f   :  { %v2081_v22 = vpop.f32.mrb[44].mxu1  ;;  %v2018_v23 = vpop.f32.mrb[45].mxu0 }
 0x150   :  { %v2019_v25 = vadd.f32 %v2018_v23, %v2017_v20  ;;  %v2082_v27 = vpop.f32.mrb[45].mxu1  ;;  %v2020_v28 = vpop.f32.mrb[46].mxu0 }
 0x151   :  { %v2083_v29 = vadd.f32 %v2082_v27, %v2081_v22  ;;  %v2084_v31 = vpop.f32.mrb[46].mxu1  ;;  %v2021_v34 = vpop.f32.mrb[47].mxu0 }
 0x152   :  { %v1299_v62 = vadd.f32 %v2019_v25, %v2827_v14  ;;  %v2022_v36 = vadd.f32 %v2021_v34, %v2020_v28  ;;  %v2085_v37 = vpop.f32.mrb[47].mxu1 }
 0x153   :  { %v2086_v38 = vadd.f32 %v2085_v37, %v2084_v31 }
 0x154   :  { %v1302_v0 = vadd.f32 %v2022_v36, %v2830_v16  ;;  %v2876_v39 = vadd.f32 %v2083_v29, %v1299_v62 }
 0x156   :  { %v2023_v40 = vpop.f32.mrb[48].mxu0  ;;  %v2878_v41 = vadd.f32 %v2086_v38, %v1302_v0 }
 0x157   :  { %v2087_v42 = vpop.f32.mrb[48].mxu1  ;;  %v2024_v43 = vpop.f32.mrb[49].mxu0 }
 0x158   :  { %v2025_v44 = vadd.f32 %v2024_v43, %v2023_v40  ;;  %v2088_v18 = vpop.f32.mrb[49].mxu1  ;;  %v2026_v49 = vpop.f32.mrb[50].mxu0 }
 0x159   :  { %v2089_v50 = vadd.f32 %v2088_v18, %v2087_v42  ;;  %v2090_v52 = vpop.f32.mrb[50].mxu1  ;;  %v2027_v54 = vpop.f32.mrb[51].mxu0 }
 0x15a   :  { %v1307_v14 = vadd.f32 %v2025_v44, %v2833_v33  ;;  %v2028_v55 = vadd.f32 %v2027_v54, %v2026_v49  ;;  %v2091_v56 = vpop.f32.mrb[51].mxu1 }
 0x15b   :  { %v2092_v57 = vadd.f32 %v2091_v56, %v2090_v52 }
 0x15c   :  { %v1310_v16 = vadd.f32 %v2028_v55, %v2836_v35  ;;  %v1404_v58 = vadd.f32 %v2089_v50, %v1307_v14 }
 0x15e   :  { %v2029_v30 = vpop.f32.mrb[52].mxu0  ;;  %v2882_v59 = vadd.f32 %v2092_v57, %v1310_v16 }
 0x15f   :  { %v2093_v60 = vpop.f32.mrb[52].mxu1  ;;  %v2030_v61 = vpop.f32.mrb[53].mxu0 }
 0x160   :  { %v2031_v32 = vadd.f32 %v2030_v61, %v2029_v30  ;;  %v2094_v1 = vpop.f32.mrb[53].mxu1  ;;  %v2032_v3 = vpop.f32.mrb[54].mxu0 }
 0x161   :  { %v2095_v4 = vadd.f32 %v2094_v1, %v2093_v60  ;;  %v2096_v6 = vpop.f32.mrb[54].mxu1  ;;  %v2033_v8 = vpop.f32.mrb[55].mxu0 }
 0x162   :  { %v1315_v9 = vadd.f32 %v2031_v32, %v2839_v51  ;;  %v2034_v33 = vadd.f32 %v2033_v8, %v2032_v3  ;;  %v2097_v10 = vpop.f32.mrb[55].mxu1 }
 0x163   :  { %v2098_v11 = vadd.f32 %v2097_v10, %v2096_v6 }
 0x164   :  { %v1318_v12 = vadd.f32 %v2034_v33, %v2842_v53  ;;  %v1412_v35 = vadd.f32 %v2095_v4, %v1315_v9 }
 0x166   :  { %v2035_v46 = vpop.f32.mrb[56].mxu0  ;;  %v1415_v13 = vadd.f32 %v2098_v11, %v1318_v12 }
 0x167   :  { %v2099_v15 = vpop.f32.mrb[56].mxu1  ;;  %v2036_v17 = vpop.f32.mrb[57].mxu0 }
 0x168   :  { %v2037_v48 = vadd.f32 %v2036_v17, %v2035_v46  ;;  %v2100_v20 = vpop.f32.mrb[57].mxu1  ;;  %v2038_v22 = vpop.f32.mrb[58].mxu0 }
 0x169   :  { %v2101_v23 = vadd.f32 %v2100_v20, %v2099_v15  ;;  %v2102_v25 = vpop.f32.mrb[58].mxu1  ;;  %v2039_v27 = vpop.f32.mrb[59].mxu0 }
 0x16a   :  { %v1323_v28 = vadd.f32 %v2037_v48, %v2845_v5  ;;  %v2040_v29 = vadd.f32 %v2039_v27, %v2038_v22  ;;  %v2103_v51 = vpop.f32.mrb[59].mxu1 }
 0x16b   :  { %v2104_v31 = vadd.f32 %v2103_v51, %v2102_v25 }
 0x16c   :  { %v1326_v34 = vadd.f32 %v2040_v29, %v2848_v7  ;;  %v1420_v62 = vadd.f32 %v2101_v23, %v1323_v28 }
 0x16e   :  { %v2041_v53 = vpop.f32.mrb[60].mxu0  ;;  %v2888_v36 = vadd.f32 %v2104_v31, %v1326_v34 }
 0x16f   :  { %v2105_v37 = vpop.f32.mrb[60].mxu1  ;;  %v2042_v38 = vpop.f32.mrb[61].mxu0 }
 0x170   :  { %v2043_v0 = vadd.f32 %v2042_v38, %v2041_v53  ;;  %v2106_v40 = vpop.f32.mrb[61].mxu1  ;;  %v2044_v42 = vpop.f32.mrb[62].mxu0 }
 0x171   :  { %v2107_v43 = vadd.f32 %v2106_v40, %v2105_v37  ;;  %v2108_v44 = vpop.f32.mrb[62].mxu1  ;;  %v2045_v18 = vpop.f32.mrb[63].mxu0 }
 0x172   :  { %v1331_v49 = vadd.f32 %v2043_v0, %v2851_v24  ;;  %v2046_v5 = vadd.f32 %v2045_v18, %v2044_v42  ;;  %v2109_v50 = vpop.f32.mrb[63].mxu1 }
 0x173   :  { %v2110_v52 = vadd.f32 %v2109_v50, %v2108_v44 }
 0x174   :  { %v1334_v54 = vadd.f32 %v2046_v5, %v2854_v26  ;;  %v1428_v7 = vadd.f32 %v2107_v43, %v1331_v49 }
 0x176   :  { %v2145_v14 = vpop.f32.mrb[64].mxu0  ;;  %v1431_v55 = vadd.f32 %v2110_v52, %v1334_v54 }
 0x177   :  { %v1477_v56 = vadd.f32 %v2145_v14, %v2864_v63  ;;  %v2153_v57 = vpop.f32.mrb[64].mxu1  ;;  %v1468_v16 = vpop.f32.mrb[65].mxu0 }
 0x178   :  { %v1509_v30 = vadd.f32 %v2153_v57, %v1412_v35  ;;  %v1469_v60 = vadd.f32 %v1468_v16, %v2858_v45  ;;  %v1500_v61 = vpop.f32.mrb[65].mxu1  ;;  %v2146_v32 = vpop.f32.mrb[66].mxu0 }
 0x179   :  { %v1501_v1 = vadd.f32 %v1500_v61, %v1404_v58  ;;  %v1480_v24 = vadd.f32 %v2146_v32, %v2866_v2  ;;  %v2154_v3 = vpop.f32.mrb[66].mxu1  ;;  %v1471_v4 = vpop.f32.mrb[67].mxu0  ;;  %v1533_v9 = vmax.f32 %v1477_v56, 0.0 }
 0x17a   :  { %v1512_v6 = vadd.f32 %v2154_v3, %v1415_v13  ;;  %v1472_v26 = vadd.f32 %v1471_v4, %v2860_v47  ;;  %v1503_v8 = vpop.f32.mrb[67].mxu1  ;;  %v1541_v10 = vmax.f32 %v1509_v30, 0.0  ;;  %v1531_v11 = vmax.f32 %v1469_v60, 0.0 }
 0x17b   :  { %v1534_v33 = vmax.f32 %v1480_v24, 0.0  ;;  %v1504_v63 = vadd.f32 %v1503_v8, %v2882_v59  ;;  %v1539_v45 = vmax.f32 %v1501_v1, 0.0 }
 0x17c   :  { %v1542_v12 = vmax.f32 %v1512_v6, 0.0  ;;  %v1532_v35 = vmax.f32 %v1472_v26, 0.0 }
 0x17d   :  { %v1816_v46 = vpack.c.bf16 %v1534_v33, %v1533_v9  ;;  %v1540_v15 = vmax.f32 %v1504_v63, 0.0 }
 0x17e   :  { %v1836_v58 = vpack.c.bf16 %v1542_v12, %v1541_v10  ;;  %v1811_v17 = vpack.c.bf16 %v1532_v35, %v1531_v11  ;;  %v2149_v2 = vpop.f32.mrb[68].mxu0 }
 0x17f   :  { %1848 = vst [vmem:[%s2929_s3 + $0x8] sm:$0xff] %v1816_v46   ;;  %v1831_v47 = vpack.c.bf16 %v1540_v15, %v1539_v45  ;;  %v1493_v13 = vadd.f32 %v2149_v2, %v2876_v39  ;;  %v2157_v48 = vpop.f32.mrb[68].mxu1  ;;  %v1484_v20 = vpop.f32.mrb[69].mxu0 }
 0x180   :  { %1852 = vst [vmem:[%s2929_s3 + $0x28] sm:$0xff] %v1836_v58   ;;  %1812 = vst [vmem:[%s2929_s3] sm:$0xff] %v1811_v17   ;;  %v1525_v59 = vadd.f32 %v2157_v48, %v1428_v7  ;;  %v1485_v22 = vadd.f32 %v1484_v20, %v2870_v19  ;;  %v1516_v23 = vpop.f32.mrb[69].mxu1  ;;  %v2150_v25 = vpop.f32.mrb[70].mxu0 }
 0x181   :  { %1851 = vst [vmem:[%s2929_s3 + $0x20] sm:$0xff] %v1831_v47   ;;  %v1517_v39 = vadd.f32 %v1516_v23, %v1420_v62  ;;  %v1496_v27 = vadd.f32 %v2150_v25, %v2878_v41  ;;  %v2158_v28 = vpop.f32.mrb[70].mxu1  ;;  %v1487_v29 = vpop.f32.mrb[71].mxu0  ;;  %v1537_v53 = vmax.f32 %v1493_v13, 0.0 }
 0x182   :  { %v1528_v51 = vadd.f32 %v2158_v28, %v1431_v55  ;;  %v1488_v31 = vadd.f32 %v1487_v29, %v2872_v21  ;;  %v1519_v34 = vpop.f32.mrb[71].mxu1  ;;  %v1545_v19 = vmax.f32 %v1525_v59, 0.0  ;;  %v1535_v0 = vmax.f32 %v1485_v22, 0.0 }
 0x183   :  { %v1538_v37 = vmax.f32 %v1496_v27, 0.0  ;;  %v1520_v38 = vadd.f32 %v1519_v34, %v2888_v36  ;;  %v1543_v43 = vmax.f32 %v1517_v39, 0.0 }
 0x184   :  { %v1546_v40 = vmax.f32 %v1528_v51, 0.0  ;;  %v1536_v42 = vmax.f32 %v1488_v31, 0.0 }
 0x185   :  { %v1826_v44 = vpack.c.bf16 %v1538_v37, %v1537_v53  ;;  %v1544_v18 = vmax.f32 %v1520_v38, 0.0 }
 0x186   :  { %v1846_v62 = vpack.c.bf16 %v1546_v40, %v1545_v19  ;;  %v1821_v49 = vpack.c.bf16 %v1536_v42, %v1535_v0 }
 0x187   :  { %1850 = vst [vmem:[%s2929_s3 + $0x18] sm:$0xff] %v1826_v44   ;;  %v1841_v41 = vpack.c.bf16 %v1544_v18, %v1543_v43 }
 0x188   :  { %1854 = vst [vmem:[%s2929_s3 + $0x38] sm:$0xff] %v1846_v62   ;;  %1849 = vst [vmem:[%s2929_s3 + $0x10] sm:$0xff] %v1821_v49  }
 0x189   :  { %1853 = vst [vmem:[%s2929_s3 + $0x30] sm:$0xff] %v1841_v41  }

</bundles_post_ra>
